<compile_context>
chip_gen: v7x
topology: tpu7x:2x2x1
jax: 0.10.0
libtpu: 0.0.40
codegen_flags: <defaults>
</compile_context>

<pallas_src>
import functools

import numpy as np
import jax
import jax.numpy as jnp
from jax.experimental import pallas as pl
from jax.experimental.pallas import tpu as pltpu

NEG_INF = -1e30          # additive key-padding mask value
LN_EPS = 1e-5            # PyTorch LayerNorm default eps
SUBLANE = 8              # sublane alignment for padded list length
LIST_TILE = 8            # max lists processed per grid step

MM_DTYPE = jnp.float32       # set jnp.bfloat16 on v6e/v7x for 2x MXU throughput
APPROX_RECIP = False         # True -> EUP vrcp fast path (bf16-ish precision)


def _round_up(n, m):
    return ((n + m - 1) // m) * m


def _mm(a, b):
    return jnp.dot(a.astype(MM_DTYPE), b.astype(MM_DTYPE),
                   preferred_element_type=jnp.float32)


def _mm_nt(a, b):
    # a @ b.T without materializing a transpose
    return jax.lax.dot_general(a.astype(MM_DTYPE), b.astype(MM_DTYPE),
                               (((1,), (1,)), ((), ())),
                               preferred_element_type=jnp.float32)


def _gelu_tanh(x):
    # TODO(synk): PyTorch activation='gelu' is the exact erf GELU; the tanh
    # approximation is used here (kernel and reference) for robust TPU lowering.
    c = 0.7978845608028654  # sqrt(2/pi)
    return 0.5 * x * (1.0 + jnp.tanh(c * (x + 0.044715 * x * x * x)))


def _layer_norm(x, gamma, beta):
    mu = jnp.mean(x, axis=-1, keepdims=True)
    xc = x - mu
    var = jnp.mean(xc * xc, axis=-1, keepdims=True)
    return xc * jax.lax.rsqrt(var + LN_EPS) * gamma + beta


def _const_spec(a):
    """Full-array block with a constant index_map -> stays VMEM-resident."""
    zeros = (0,) * a.ndim
    return pl.BlockSpec(a.shape, lambda *_: zeros)


# ---------------------------------------------------------------------------
# Fully fused RankFormer kernel: all TF layers + rank head (+ list head)
# ---------------------------------------------------------------------------
def _rankformer_kernel(*refs, n_layers, bt, l_pad, d, has_list):
    it = iter(refs)
    x_ref = next(it)          # [bt*l_pad, d] row-flattened padded lists
    mask_ref = next(it)       # [bt, 1, l_pad] additive key mask
    wqkv = next(it); bqkv = next(it)        # [NL, d, 3d] / [NL, 1, 3d]
    wo = next(it); bo = next(it)            # [NL, d, d]  / [NL, 1, d]
    ln1g = next(it); ln1b = next(it)
    ln2g = next(it); ln2b = next(it)
    w1 = next(it); b1 = next(it)            # [NL, d, ff] / [NL, 1, ff]
    w2 = next(it); b2 = next(it)            # [NL, ff, d] / [NL, 1, d]
    rh_w1i = next(it)                       # [d, H] item half of rank-head w1
    rh_w1l = next(it) if has_list else None  # [d, H] list-token half
    rh_b1 = next(it); rh_w2 = next(it); rh_b2 = next(it)   # [1,H] / [1,H] / [1,1]
    if has_list:
        lh_w1 = next(it); lh_b1 = next(it)  # [d, H] / [1, H]
        lh_w2 = next(it); lh_b2 = next(it)  # [H, MT] / [1, MT]
    rank_ref = next(it)                     # [bt, l_pad, 1]
    list_ref = next(it) if has_list else None   # [bt, 1, MT]

    x = x_ref[...]                          # [bt*l_pad, d], f32
    mask_all = mask_ref[...]                # [bt, 1, l_pad]

    # ---- all transformer encoder layers (pre-LN, nhead=1, no dropout) ----
    for l in range(n_layers):
        y = _layer_norm(x, ln1g[l], ln1b[l])
        # fused QKV; the 1/sqrt(d) scale is already folded into the q columns
        qkv = _mm(y, wqkv[l]) + bqkv[l]
        q = qkv[:, :d]
        k = qkv[:, d:2 * d]
        v = qkv[:, 2 * d:]
        ctx_rows = []
        for b in range(bt):                 # per-list L x L attention
            r0 = b * l_pad
            qb = q[r0:r0 + l_pad]
            kb = k[r0:r0 + l_pad]
            vb = v[r0:r0 + l_pad]
            s = _mm_nt(qb, kb) + mask_all[b]            # [l_pad, l_pad]
            s = s - jnp.max(s, axis=-1, keepdims=True)
            e = jnp.exp(s)
            ctxb = _mm(e, vb)                            # deferred normalization
            inv = pl.reciprocal(jnp.sum(e, axis=-1, keepdims=True),
                                approx=APPROX_RECIP)
            ctx_rows.append(ctxb * inv)
        ctx = ctx_rows[0] if bt == 1 else jnp.concatenate(ctx_rows, axis=0)
        x = x + _mm(ctx, wo[l]) + bo[l]
        z = _layer_norm(x, ln2g[l], ln2b[l])
        h = _gelu_tanh(_mm(z, w1[l]) + b1[l])
        x = x + _mm(h, w2[l]) + b2[l]

    # ---- fused score heads ----
    # Item half of the rank head runs on all rows at once (fills MXU rows).
    h_item = _mm(x, rh_w1i[...]) + rh_b1[...]            # [bt*l_pad, H]
    for b in range(bt):
        r0 = b * l_pad
        hb = h_item[r0:r0 + l_pad]
        if has_list:
            list_tok = x[r0:r0 + 1]                      # [1, d] list token row
            hb = hb + _mm(list_tok, rh_w1l[...])         # broadcast over item rows
        hb = jnp.maximum(hb, 0.0)
        # out_dim == 1: VPU multiply + lane reduce, no 1-column MXU matmul;
        # store exactly one score per row (no 128-wide redundant broadcast).
        score = jnp.sum(hb * rh_w2[...], axis=-1, keepdims=True) + rh_b2[...]
        rank_ref[b] = score.astype(rank_ref.dtype)       # [l_pad, 1]
        if has_list:
            lt = x[r0:r0 + 1]
            lhid = jnp.maximum(_mm(lt, lh_w1[...]) + lh_b1[...], 0.0)
            ls = _mm(lhid, lh_w2[...]) + lh_b2[...]      # [1, max_target]
            list_ref[b] = ls.astype(list_ref.dtype)


# ---------------------------------------------------------------------------
# Wrapper: padding / scatter, one pallas_call, single gather of valid scores
# ---------------------------------------------------------------------------
def rankformer_forward(feat, lengths, params):
    """feat: [N, D] f32; lengths: python list of per-list lengths (sum == N)."""
    # TODO(synk): compute_loss (SoftmaxLoss / OrdinalLoss) is training-only;
    # dropout layers are identity in eval mode and are omitted here.
    lengths = [int(n) for n in lengths]
    _, d = feat.shape
    B = len(lengths)
    has_list = params["list_emb"] is not None
    extra = 1 if has_list else 0
    l_pad = _round_up(max(lengths) + extra, SUBLANE)
    # lists per grid step: batch up to LIST_TILE, but keep >= 2 grid steps when
    # possible so v7x can shard the parallel axis across both TensorCores.
    bt = max(1, min(LIST_TILE, (B + 1) // 2))
    b_pad = _round_up(B, bt)
    n_rows = b_pad * l_pad

    # Static-index scatters (no per-list concat chain between XLA ops).
    item_idx = np.array([b * l_pad + extra + i
                         for b, n in enumerate(lengths) for i in range(n)],
                        np.int32)
    valid_idx = np.array([b * l_pad + j
                          for b, n in enumerate(lengths) for j in range(n + extra)],
                         np.int32)
    x_flat = jnp.zeros((n_rows, d), jnp.float32).at[item_idx].set(feat)
    if has_list:
        tok_idx = np.arange(B, dtype=np.int32) * l_pad
        x_flat = x_flat.at[tok_idx].set(
            jnp.broadcast_to(params["list_emb"], (B, d)))
    mask = jnp.full((n_rows,), NEG_INF, jnp.float32).at[valid_idx].set(0.0)
    mask = mask.reshape(b_pad, 1, l_pad)

    tf = params["tf"]
    rh = params["rank_head"]
    weights = [tf["wqkv"], tf["bqkv"], tf["wo"], tf["bo"],
               tf["ln1_g"], tf["ln1_b"], tf["ln2_g"], tf["ln2_b"],
               tf["w1"], tf["b1"], tf["w2"], tf["b2"],
               rh["w1_item"]]
    if has_list:
        weights.append(rh["w1_list"])
    weights += [rh["b1"], rh["w2"], rh["b2"]]
    if has_list:
        lh = params["list_head"]
        mt = lh["w2"].shape[1]
        weights += [lh["w1"], lh["b1"], lh["w2"], lh["b2"]]

    n_layers = tf["wqkv"].shape[0]
    kernel = functools.partial(_rankformer_kernel, n_layers=n_layers, bt=bt,
                               l_pad=l_pad, d=d, has_list=has_list)

    rank_shape = jax.ShapeDtypeStruct((b_pad, l_pad, 1), jnp.float32)
    rank_spec = pl.BlockSpec((bt, l_pad, 1), lambda i: (i, 0, 0))
    if has_list:
        out_shape = (rank_shape, jax.ShapeDtypeStruct((b_pad, 1, mt), jnp.float32))
        out_specs = (rank_spec, pl.BlockSpec((bt, 1, mt), lambda i: (i, 0, 0)))
    else:
        out_shape = rank_shape
        out_specs = rank_spec

    in_specs = ([pl.BlockSpec((bt * l_pad, d), lambda i: (i, 0)),
                 pl.BlockSpec((bt, 1, l_pad), lambda i: (i, 0, 0))]
                + [_const_spec(w) for w in weights])

    # NOTE(v7x): per-step VMEM footprint here is a few tens of KiB; for scaled
    # configs (large D/ff/L) re-derive it against the 64 MiB physical VMEM and
    # set pltpu.CompilerParams(vmem_limit_bytes=...) or tile attention over keys.
    outs = pl.pallas_call(
        kernel,
        out_shape=out_shape,
        grid_spec=pl.GridSpec(
            grid=(b_pad // bt,),
            in_specs=in_specs,
            out_specs=out_specs,
        ),
        compiler_params=pltpu.CompilerParams(
            dimension_semantics=("parallel",)),
    )(x_flat, mask, *weights)

    if has_list:
        rank_raw, list_raw = outs
    else:
        rank_raw = outs
    rank_score = rank_raw.reshape(-1)[item_idx]     # single gather of valid rows
    if not has_list:
        return rank_score
    list_score = list_raw[:B, 0, :]
    return rank_score, list_score


# ---------------------------------------------------------------------------
# Parameter init (PyTorch-style), stored directly in kernel layout
# ---------------------------------------------------------------------------
def _linear_init(key, fan_in, fan_out):
    kw, kb = jax.random.split(key)
    bound = 1.0 / (fan_in ** 0.5)
    w = jax.random.uniform(kw, (fan_out, fan_in), jnp.float32, -bound, bound)
    b = jax.random.uniform(kb, (fan_out,), jnp.float32, -bound, bound)
    return w, b


def _init_tf_layer(key, d, ff):
    k_in, k_out, k_l1, k_l2 = jax.random.split(key, 4)
    w_in, b_in = _linear_init(k_in, d, 3 * d)       # packed in_proj (q|k|v)
    wo, bo = _linear_init(k_out, d, d)
    w1, b1 = _linear_init(k_l1, d, ff)
    w2, b2 = _linear_init(k_l2, ff, d)
    # kernel-ready layout: [in, out] weights, [1, out] bias rows
    wqkv = w_in.T                                    # [d, 3d]
    bqkv = b_in[None, :]
    # fold the 1/sqrt(d) attention scale into the q projection at init time
    scale = 1.0 / (d ** 0.5)
    wqkv = wqkv.at[:, :d].multiply(scale)
    bqkv = bqkv.at[:, :d].multiply(scale)
    ones = jnp.ones((1, d), jnp.float32)
    zeros = jnp.zeros((1, d), jnp.float32)
    return dict(wqkv=wqkv, bqkv=bqkv, wo=wo.T, bo=bo[None, :],
                ln1_g=ones, ln1_b=zeros, ln2_g=ones, ln2_b=zeros,
                w1=w1.T, b1=b1[None, :], w2=w2.T, b2=b2[None, :])


def _init_rank_head(key, d, rank_in, hidden, has_list):
    k1, k2 = jax.random.split(key)
    w1, b1 = _linear_init(k1, rank_in, hidden)
    w2, b2 = _linear_init(k2, hidden, 1)
    w1t = w1.T                                       # [rank_in, hidden]
    head = dict(w1_item=w1t[:d], b1=b1[None, :],
                w2=w2, b2=b2[None, :])               # w2 kept as [1, hidden] row
    if has_list:
        head["w1_list"] = w1t[d:]                    # list-token half of w1
    return head


def _init_list_head(key, d, hidden, max_target):
    k1, k2 = jax.random.split(key)
    w1, b1 = _linear_init(k1, d, hidden)
    w2, b2 = _linear_init(k2, hidden, max_target)
    return dict(w1=w1.T, b1=b1[None, :], w2=w2.T, b2=b2[None, :])


def init_rankformer_params(key, input_dim, max_target, tf_dim_feedforward,
                           tf_num_layers, head_hidden, list_pred_strength):
    keys = jax.random.split(key, tf_num_layers + 3)
    layers = [_init_tf_layer(keys[i], input_dim, tf_dim_feedforward)
              for i in range(tf_num_layers)]
    # stack per-layer weights along a leading [n_layers, ...] axis
    tf = {name: jnp.stack([lp[name] for lp in layers]) for name in layers[0]}
    has_list = list_pred_strength > 0.0
    rank_in = input_dim * 2 if has_list else input_dim
    params = dict(
        tf=tf,
        rank_head=_init_rank_head(keys[tf_num_layers], input_dim, rank_in,
                                  head_hidden, has_list),
        list_emb=None, list_head=None)
    if has_list:
        params["list_emb"] = jax.random.normal(
            keys[tf_num_layers + 1], (1, input_dim), jnp.float32)
        params["list_head"] = _init_list_head(
            keys[tf_num_layers + 2], input_dim, head_hidden, max_target)
    return params


# ---------------------------------------------------------------------------
# Pure-JAX reference (same math, same stored parameter layout)
# ---------------------------------------------------------------------------
def rankformer_forward_ref(feat, lengths, params):
    lengths = [int(n) for n in lengths]
    d = feat.shape[1]
    has_list = params["list_emb"] is not None
    extra = 1 if has_list else 0
    lmax = max(lengths) + extra
    rows, masks = [], []
    off = 0
    for n in lengths:
        seq = feat[off:off + n]
        off += n
        if has_list:
            seq = jnp.concatenate([params["list_emb"], seq], axis=0)
        pad = lmax - (n + extra)
        rows.append(jnp.pad(seq, ((0, pad), (0, 0))))
        masks.append(jnp.concatenate([jnp.zeros((n + extra,), jnp.float32),
                                      jnp.full((pad,), NEG_INF, jnp.float32)]))
    x = jnp.stack(rows)                       # [B, L, D]
    mask_add = jnp.stack(masks)[:, None, :]   # [B, 1, L]

    tf = params["tf"]
    for l in range(tf["wqkv"].shape[0]):
        y = _layer_norm(x, tf["ln1_g"][l], tf["ln1_b"][l])
        qkv = y @ tf["wqkv"][l] + tf["bqkv"][l]
        q, k, v = qkv[..., :d], qkv[..., d:2 * d], qkv[..., 2 * d:]
        s = jnp.einsum("bld,bmd->blm", q, k) + mask_add
        s = s - jnp.max(s, axis=-1, keepdims=True)
        e = jnp.exp(s)
        p = e / jnp.sum(e, axis=-1, keepdims=True)
        x = x + jnp.einsum("blm,bmd->bld", p, v) @ tf["wo"][l] + tf["bo"][l]
        z = _layer_norm(x, tf["ln2_g"][l], tf["ln2_b"][l])
        x = x + _gelu_tanh(z @ tf["w1"][l] + tf["b1"][l]) @ tf["w2"][l] + tf["b2"][l]

    rh = params["rank_head"]
    if has_list:
        list_tok = x[:, 0]
        items = x[:, 1:]
        flat_items = jnp.concatenate([items[b, :n] for b, n in enumerate(lengths)], 0)
        flat_tok = jnp.concatenate(
            [jnp.broadcast_to(list_tok[b:b + 1], (n, d)) for b, n in enumerate(lengths)], 0)
        h = jnp.maximum(flat_items @ rh["w1_item"] + flat_tok @ rh["w1_list"]
                        + rh["b1"], 0.0)
    else:
        flat_items = jnp.concatenate([x[b, :n] for b, n in enumerate(lengths)], 0)
        h = jnp.maximum(flat_items @ rh["w1_item"] + rh["b1"], 0.0)
    rank_score = jnp.sum(h * rh["w2"], axis=-1) + rh["b2"][0, 0]
    if not has_list:
        return rank_score
    lh = params["list_head"]
    hl = jnp.maximum(list_tok @ lh["w1"] + lh["b1"], 0.0)
    list_score = hl @ lh["w2"] + lh["b2"]
    return rank_score, list_score


if __name__ == "__main__":
    # RankFormer(input_dim=16, max_target=4, tf_dim_feedforward=32, tf_nhead=1,
    #            tf_num_layers=2, head_hidden_layers=[32], dropout (eval)=identity,
    #            list_pred_strength=0.1)
    INPUT_DIM = 16
    TF_FF = 32
    TF_NHEAD = 1            # TODO(synk): multi-head (nhead > 1) attention not implemented
    TF_LAYERS = 2
    HEAD_HIDDEN = 32
    MAX_TARGET = 4
    LIST_PRED_STRENGTH = 0.1
    lengths = [3, 5]        # two lists, N = 8 items total
    assert TF_NHEAD == 1

    key = jax.random.PRNGKey(0)
    key, kf = jax.random.split(key)
    n_items = sum(lengths)
    feat = jax.random.normal(kf, (n_items, INPUT_DIM), jnp.float32)
    params = init_rankformer_params(key, INPUT_DIM, MAX_TARGET, TF_FF,
                                    TF_LAYERS, HEAD_HIDDEN, LIST_PRED_STRENGTH)

    rank_score, list_score = rankformer_forward(feat, lengths, params)
    jax.block_until_ready((rank_score, list_score))

    rank_ref, list_ref = rankformer_forward_ref(feat, lengths, params)
    assert rank_score.shape == (n_items,)
    assert list_score.shape == (len(lengths), MAX_TARGET)
    assert jnp.allclose(rank_score, rank_ref, atol=5e-4, rtol=5e-4), (
        float(jnp.max(jnp.abs(rank_score - rank_ref))))
    assert jnp.allclose(list_score, list_ref, atol=5e-4, rtol=5e-4), (
        float(jnp.max(jnp.abs(list_score - list_ref))))

    print("KERNEL_OK")
</pallas_src>

<mosaic_0001>
module attributes {stable_mosaic.version = 11 : i64} {
  func.func @_rankformer_kernel(%arg0: i32, %arg1: memref<8x16xf32, #tpu.memory_space<vmem>>, %arg2: memref<1x1x8xf32, #tpu.memory_space<vmem>>, %arg3: memref<2x16x48xf32, #tpu.memory_space<vmem>>, %arg4: memref<2x1x48xf32, #tpu.memory_space<vmem>>, %arg5: memref<2x16x16xf32, #tpu.memory_space<vmem>>, %arg6: memref<2x1x16xf32, #tpu.memory_space<vmem>>, %arg7: memref<2x1x16xf32, #tpu.memory_space<vmem>>, %arg8: memref<2x1x16xf32, #tpu.memory_space<vmem>>, %arg9: memref<2x1x16xf32, #tpu.memory_space<vmem>>, %arg10: memref<2x1x16xf32, #tpu.memory_space<vmem>>, %arg11: memref<2x16x32xf32, #tpu.memory_space<vmem>>, %arg12: memref<2x1x32xf32, #tpu.memory_space<vmem>>, %arg13: memref<2x32x16xf32, #tpu.memory_space<vmem>>, %arg14: memref<2x1x16xf32, #tpu.memory_space<vmem>>, %arg15: memref<16x32xf32, #tpu.memory_space<vmem>>, %arg16: memref<16x32xf32, #tpu.memory_space<vmem>>, %arg17: memref<1x32xf32, #tpu.memory_space<vmem>>, %arg18: memref<1x32xf32, #tpu.memory_space<vmem>>, %arg19: memref<1x1xf32, #tpu.memory_space<vmem>>, %arg20: memref<16x32xf32, #tpu.memory_space<vmem>>, %arg21: memref<1x32xf32, #tpu.memory_space<vmem>>, %arg22: memref<32x4xf32, #tpu.memory_space<vmem>>, %arg23: memref<1x4xf32, #tpu.memory_space<vmem>>, %arg24: memref<1x8x1xf32, #tpu.memory_space<vmem>>, %arg25: memref<1x1x4xf32, #tpu.memory_space<vmem>>) attributes {dimension_semantics = [#tpu.dimension_semantics<parallel>], iteration_bounds = array<i64: 2>, scalar_prefetch = 0 : i64, scratch_operands = 0 : i64, tpu.core_type = #tpu.core_type<tc>, window_params = [{transform_indices = @transform_0, window_bounds = array<i64: 8, 16>}, {transform_indices = @transform_1, window_bounds = array<i64: 1, 1, 8>}, {pipeline_mode = #tpu.pipeline_mode<synchronous>, transform_indices = @transform_2, window_bounds = array<i64: 2, 16, 48>}, {pipeline_mode = #tpu.pipeline_mode<synchronous>, transform_indices = @transform_3, window_bounds = array<i64: 2, 1, 48>}, {pipeline_mode = #tpu.pipeline_mode<synchronous>, transform_indices = @transform_4, window_bounds = array<i64: 2, 16, 16>}, {pipeline_mode = #tpu.pipeline_mode<synchronous>, transform_indices = @transform_5, window_bounds = array<i64: 2, 1, 16>}, {pipeline_mode = #tpu.pipeline_mode<synchronous>, transform_indices = @transform_6, window_bounds = array<i64: 2, 1, 16>}, {pipeline_mode = #tpu.pipeline_mode<synchronous>, transform_indices = @transform_7, window_bounds = array<i64: 2, 1, 16>}, {pipeline_mode = #tpu.pipeline_mode<synchronous>, transform_indices = @transform_8, window_bounds = array<i64: 2, 1, 16>}, {pipeline_mode = #tpu.pipeline_mode<synchronous>, transform_indices = @transform_9, window_bounds = array<i64: 2, 1, 16>}, {pipeline_mode = #tpu.pipeline_mode<synchronous>, transform_indices = @transform_10, window_bounds = array<i64: 2, 16, 32>}, {pipeline_mode = #tpu.pipeline_mode<synchronous>, transform_indices = @transform_11, window_bounds = array<i64: 2, 1, 32>}, {pipeline_mode = #tpu.pipeline_mode<synchronous>, transform_indices = @transform_12, window_bounds = array<i64: 2, 32, 16>}, {pipeline_mode = #tpu.pipeline_mode<synchronous>, transform_indices = @transform_13, window_bounds = array<i64: 2, 1, 16>}, {pipeline_mode = #tpu.pipeline_mode<synchronous>, transform_indices = @transform_14, window_bounds = array<i64: 16, 32>}, {pipeline_mode = #tpu.pipeline_mode<synchronous>, transform_indices = @transform_15, window_bounds = array<i64: 16, 32>}, {pipeline_mode = #tpu.pipeline_mode<synchronous>, transform_indices = @transform_16, window_bounds = array<i64: 1, 32>}, {pipeline_mode = #tpu.pipeline_mode<synchronous>, transform_indices = @transform_17, window_bounds = array<i64: 1, 32>}, {pipeline_mode = #tpu.pipeline_mode<synchronous>, transform_indices = @transform_18, window_bounds = array<i64: 1, 1>}, {pipeline_mode = #tpu.pipeline_mode<synchronous>, transform_indices = @transform_19, window_bounds = array<i64: 16, 32>}, {pipeline_mode = #tpu.pipeline_mode<synchronous>, transform_indices = @transform_20, window_bounds = array<i64: 1, 32>}, {pipeline_mode = #tpu.pipeline_mode<synchronous>, transform_indices = @transform_21, window_bounds = array<i64: 32, 4>}, {pipeline_mode = #tpu.pipeline_mode<synchronous>, transform_indices = @transform_22, window_bounds = array<i64: 1, 4>}, {transform_indices = @transform_23, window_bounds = array<i64: 1, 8, 1>}, {transform_indices = @transform_24, window_bounds = array<i64: 1, 1, 4>}]} {
    %c0 = arith.constant 0 : index
    %c0_0 = arith.constant 0 : index
    %0 = vector.load %arg1[%c0, %c0_0] : memref<8x16xf32, #tpu.memory_space<vmem>>, vector<8x16xf32>
    %c0_1 = arith.constant 0 : index
    %c0_2 = arith.constant 0 : index
    %c0_3 = arith.constant 0 : index
    %1 = vector.load %arg2[%c0_1, %c0_2, %c0_3] : memref<1x1x8xf32, #tpu.memory_space<vmem>>, vector<1x1x8xf32>
    %c0_4 = arith.constant 0 : index
    %c0_5 = arith.constant 0 : index
    %c0_6 = arith.constant 0 : index
    %2 = vector.load %arg7[%c0_4, %c0_5, %c0_6] : memref<2x1x16xf32, #tpu.memory_space<vmem>>, vector<1x1x16xf32>
    %3 = vector.shape_cast %2 : vector<1x1x16xf32> to vector<1x16xf32>
    %c0_7 = arith.constant 0 : index
    %c0_8 = arith.constant 0 : index
    %c0_9 = arith.constant 0 : index
    %4 = vector.load %arg8[%c0_7, %c0_8, %c0_9] : memref<2x1x16xf32, #tpu.memory_space<vmem>>, vector<1x1x16xf32>
    %5 = vector.shape_cast %4 : vector<1x1x16xf32> to vector<1x16xf32>
    %cst = arith.constant dense<0.000000e+00> : vector<8xf32>
    %6 = vector.multi_reduction <add>, %0, %cst [1] : vector<8x16xf32> to vector<8xf32>
    %7 = vector.shape_cast %6 : vector<8xf32> to vector<8x1xf32>
    %cst_10 = arith.constant 1.600000e+01 : f32
    %8 = vector.broadcast %cst_10 : f32 to vector<8x1xf32>
    %9 = arith.divf %7, %8 : vector<8x1xf32>
    %10 = vector.broadcast %9 : vector<8x1xf32> to vector<8x16xf32>
    %11 = arith.subf %0, %10 : vector<8x16xf32>
    %12 = arith.mulf %11, %11 : vector<8x16xf32>
    %cst_11 = arith.constant dense<0.000000e+00> : vector<8xf32>
    %13 = vector.multi_reduction <add>, %12, %cst_11 [1] : vector<8x16xf32> to vector<8xf32>
    %14 = vector.shape_cast %13 : vector<8xf32> to vector<8x1xf32>
    %cst_12 = arith.constant 1.600000e+01 : f32
    %15 = vector.broadcast %cst_12 : f32 to vector<8x1xf32>
    %16 = arith.divf %14, %15 : vector<8x1xf32>
    %cst_13 = arith.constant 9.99999974E-6 : f32
    %17 = vector.broadcast %cst_13 : f32 to vector<8x1xf32>
    %18 = arith.addf %16, %17 : vector<8x1xf32>
    %19 = math.rsqrt %18 : vector<8x1xf32>
    %20 = vector.broadcast %19 : vector<8x1xf32> to vector<8x16xf32>
    %21 = arith.mulf %11, %20 : vector<8x16xf32>
    %22 = vector.broadcast %3 : vector<1x16xf32> to vector<8x16xf32>
    %23 = arith.mulf %21, %22 : vector<8x16xf32>
    %24 = vector.broadcast %5 : vector<1x16xf32> to vector<8x16xf32>
    %25 = arith.addf %23, %24 : vector<8x16xf32>
    %c0_14 = arith.constant 0 : index
    %c0_15 = arith.constant 0 : index
    %c0_16 = arith.constant 0 : index
    %26 = vector.load %arg3[%c0_14, %c0_15, %c0_16] : memref<2x16x48xf32, #tpu.memory_space<vmem>>, vector<1x16x48xf32>
    %27 = vector.shape_cast %26 : vector<1x16x48xf32> to vector<16x48xf32>
    %cst_17 = arith.constant dense<0.000000e+00> : vector<8x48xf32>
    %28 = tpu.matmul %25, %27, %cst_17 {dimension_numbers = #tpu.dot_dimension_numbers<[1], [0], [0], [1], [0, 0, 1, 1], [], []>} : vector<8x16xf32>, vector<16x48xf32>, vector<8x48xf32> -> vector<8x48xf32>
    %c0_18 = arith.constant 0 : index
    %c0_19 = arith.constant 0 : index
    %c0_20 = arith.constant 0 : index
    %29 = vector.load %arg4[%c0_18, %c0_19, %c0_20] : memref<2x1x48xf32, #tpu.memory_space<vmem>>, vector<1x1x48xf32>
    %30 = vector.shape_cast %29 : vector<1x1x48xf32> to vector<1x48xf32>
    %31 = vector.broadcast %30 : vector<1x48xf32> to vector<8x48xf32>
    %32 = arith.addf %28, %31 : vector<8x48xf32>
    %33 = vector.extract_strided_slice %32 {offsets = [0, 0], sizes = [8, 16], strides = [1, 1]} : vector<8x48xf32> to vector<8x16xf32>
    %34 = vector.extract_strided_slice %32 {offsets = [0, 16], sizes = [8, 16], strides = [1, 1]} : vector<8x48xf32> to vector<8x16xf32>
    %35 = vector.extract_strided_slice %32 {offsets = [0, 32], sizes = [8, 16], strides = [1, 1]} : vector<8x48xf32> to vector<8x16xf32>
    %cst_21 = arith.constant dense<0.000000e+00> : vector<8x8xf32>
    %36 = tpu.matmul %33, %34, %cst_21 {dimension_numbers = #tpu.dot_dimension_numbers<[1], [1], [0], [0], [0, 0, 1, 0], [], []>} : vector<8x16xf32>, vector<8x16xf32>, vector<8x8xf32> -> vector<8x8xf32>
    %37 = vector.shape_cast %1 : vector<1x1x8xf32> to vector<1x8xf32>
    %38 = vector.broadcast %37 : vector<1x8xf32> to vector<8x8xf32>
    %39 = arith.addf %36, %38 : vector<8x8xf32>
    %cst_22 = arith.constant dense<0xFF800000> : vector<8xf32>
    %40 = vector.multi_reduction <maximumf>, %39, %cst_22 [1] : vector<8x8xf32> to vector<8xf32>
    %41 = vector.shape_cast %40 : vector<8xf32> to vector<8x1xf32>
    %42 = vector.broadcast %41 : vector<8x1xf32> to vector<8x8xf32>
    %43 = arith.subf %39, %42 : vector<8x8xf32>
    %44 = math.exp %43 : vector<8x8xf32>
    %cst_23 = arith.constant dense<0.000000e+00> : vector<8x16xf32>
    %45 = tpu.matmul %44, %35, %cst_23 {dimension_numbers = #tpu.dot_dimension_numbers<[1], [0], [0], [1], [0, 0, 1, 1], [], []>} : vector<8x8xf32>, vector<8x16xf32>, vector<8x16xf32> -> vector<8x16xf32>
    %cst_24 = arith.constant dense<0.000000e+00> : vector<8xf32>
    %46 = vector.multi_reduction <add>, %44, %cst_24 [1] : vector<8x8xf32> to vector<8xf32>
    %47 = vector.shape_cast %46 : vector<8xf32> to vector<8x1xf32>
    %48 = tpu.reciprocal %47 : vector<8x1xf32> -> vector<8x1xf32>
    %49 = vector.broadcast %48 : vector<8x1xf32> to vector<8x16xf32>
    %50 = arith.mulf %45, %49 : vector<8x16xf32>
    %c0_25 = arith.constant 0 : index
    %c0_26 = arith.constant 0 : index
    %c0_27 = arith.constant 0 : index
    %51 = vector.load %arg5[%c0_25, %c0_26, %c0_27] : memref<2x16x16xf32, #tpu.memory_space<vmem>>, vector<1x16x16xf32>
    %52 = vector.shape_cast %51 : vector<1x16x16xf32> to vector<16x16xf32>
    %cst_28 = arith.constant dense<0.000000e+00> : vector<8x16xf32>
    %53 = tpu.matmul %50, %52, %cst_28 {dimension_numbers = #tpu.dot_dimension_numbers<[1], [0], [0], [1], [0, 0, 1, 1], [], []>} : vector<8x16xf32>, vector<16x16xf32>, vector<8x16xf32> -> vector<8x16xf32>
    %54 = arith.addf %0, %53 : vector<8x16xf32>
    %c0_29 = arith.constant 0 : index
    %c0_30 = arith.constant 0 : index
    %c0_31 = arith.constant 0 : index
    %55 = vector.load %arg6[%c0_29, %c0_30, %c0_31] : memref<2x1x16xf32, #tpu.memory_space<vmem>>, vector<1x1x16xf32>
    %56 = vector.shape_cast %55 : vector<1x1x16xf32> to vector<1x16xf32>
    %57 = vector.broadcast %56 : vector<1x16xf32> to vector<8x16xf32>
    %58 = arith.addf %54, %57 : vector<8x16xf32>
    %c0_32 = arith.constant 0 : index
    %c0_33 = arith.constant 0 : index
    %c0_34 = arith.constant 0 : index
    %59 = vector.load %arg9[%c0_32, %c0_33, %c0_34] : memref<2x1x16xf32, #tpu.memory_space<vmem>>, vector<1x1x16xf32>
    %60 = vector.shape_cast %59 : vector<1x1x16xf32> to vector<1x16xf32>
    %c0_35 = arith.constant 0 : index
    %c0_36 = arith.constant 0 : index
    %c0_37 = arith.constant 0 : index
    %61 = vector.load %arg10[%c0_35, %c0_36, %c0_37] : memref<2x1x16xf32, #tpu.memory_space<vmem>>, vector<1x1x16xf32>
    %62 = vector.shape_cast %61 : vector<1x1x16xf32> to vector<1x16xf32>
    %cst_38 = arith.constant dense<0.000000e+00> : vector<8xf32>
    %63 = vector.multi_reduction <add>, %58, %cst_38 [1] : vector<8x16xf32> to vector<8xf32>
    %64 = vector.shape_cast %63 : vector<8xf32> to vector<8x1xf32>
    %cst_39 = arith.constant 1.600000e+01 : f32
    %65 = vector.broadcast %cst_39 : f32 to vector<8x1xf32>
    %66 = arith.divf %64, %65 : vector<8x1xf32>
    %67 = vector.broadcast %66 : vector<8x1xf32> to vector<8x16xf32>
    %68 = arith.subf %58, %67 : vector<8x16xf32>
    %69 = arith.mulf %68, %68 : vector<8x16xf32>
    %cst_40 = arith.constant dense<0.000000e+00> : vector<8xf32>
    %70 = vector.multi_reduction <add>, %69, %cst_40 [1] : vector<8x16xf32> to vector<8xf32>
    %71 = vector.shape_cast %70 : vector<8xf32> to vector<8x1xf32>
    %cst_41 = arith.constant 1.600000e+01 : f32
    %72 = vector.broadcast %cst_41 : f32 to vector<8x1xf32>
    %73 = arith.divf %71, %72 : vector<8x1xf32>
    %cst_42 = arith.constant 9.99999974E-6 : f32
    %74 = vector.broadcast %cst_42 : f32 to vector<8x1xf32>
    %75 = arith.addf %73, %74 : vector<8x1xf32>
    %76 = math.rsqrt %75 : vector<8x1xf32>
    %77 = vector.broadcast %76 : vector<8x1xf32> to vector<8x16xf32>
    %78 = arith.mulf %68, %77 : vector<8x16xf32>
    %79 = vector.broadcast %60 : vector<1x16xf32> to vector<8x16xf32>
    %80 = arith.mulf %78, %79 : vector<8x16xf32>
    %81 = vector.broadcast %62 : vector<1x16xf32> to vector<8x16xf32>
    %82 = arith.addf %80, %81 : vector<8x16xf32>
    %c0_43 = arith.constant 0 : index
    %c0_44 = arith.constant 0 : index
    %c0_45 = arith.constant 0 : index
    %83 = vector.load %arg11[%c0_43, %c0_44, %c0_45] : memref<2x16x32xf32, #tpu.memory_space<vmem>>, vector<1x16x32xf32>
    %84 = vector.shape_cast %83 : vector<1x16x32xf32> to vector<16x32xf32>
    %cst_46 = arith.constant dense<0.000000e+00> : vector<8x32xf32>
    %85 = tpu.matmul %82, %84, %cst_46 {dimension_numbers = #tpu.dot_dimension_numbers<[1], [0], [0], [1], [0, 0, 1, 1], [], []>} : vector<8x16xf32>, vector<16x32xf32>, vector<8x32xf32> -> vector<8x32xf32>
    %c0_47 = arith.constant 0 : index
    %c0_48 = arith.constant 0 : index
    %c0_49 = arith.constant 0 : index
    %86 = vector.load %arg12[%c0_47, %c0_48, %c0_49] : memref<2x1x32xf32, #tpu.memory_space<vmem>>, vector<1x1x32xf32>
    %87 = vector.shape_cast %86 : vector<1x1x32xf32> to vector<1x32xf32>
    %88 = vector.broadcast %87 : vector<1x32xf32> to vector<8x32xf32>
    %89 = arith.addf %85, %88 : vector<8x32xf32>
    %cst_50 = arith.constant 5.000000e-01 : f32
    %90 = vector.broadcast %cst_50 : f32 to vector<8x32xf32>
    %91 = arith.mulf %90, %89 : vector<8x32xf32>
    %cst_51 = arith.constant 4.471500e-02 : f32
    %92 = vector.broadcast %cst_51 : f32 to vector<8x32xf32>
    %93 = arith.mulf %92, %89 : vector<8x32xf32>
    %94 = arith.mulf %93, %89 : vector<8x32xf32>
    %95 = arith.mulf %94, %89 : vector<8x32xf32>
    %96 = arith.addf %89, %95 : vector<8x32xf32>
    %cst_52 = arith.constant 0.797884583 : f32
    %97 = vector.broadcast %cst_52 : f32 to vector<8x32xf32>
    %98 = arith.mulf %97, %96 : vector<8x32xf32>
    %99 = math.tanh %98 : vector<8x32xf32>
    %cst_53 = arith.constant 1.000000e+00 : f32
    %100 = vector.broadcast %cst_53 : f32 to vector<8x32xf32>
    %101 = arith.addf %100, %99 : vector<8x32xf32>
    %102 = arith.mulf %91, %101 : vector<8x32xf32>
    %c0_54 = arith.constant 0 : index
    %c0_55 = arith.constant 0 : index
    %c0_56 = arith.constant 0 : index
    %103 = vector.load %arg13[%c0_54, %c0_55, %c0_56] : memref<2x32x16xf32, #tpu.memory_space<vmem>>, vector<1x32x16xf32>
    %104 = vector.shape_cast %103 : vector<1x32x16xf32> to vector<32x16xf32>
    %cst_57 = arith.constant dense<0.000000e+00> : vector<8x16xf32>
    %105 = tpu.matmul %102, %104, %cst_57 {dimension_numbers = #tpu.dot_dimension_numbers<[1], [0], [0], [1], [0, 0, 1, 1], [], []>} : vector<8x32xf32>, vector<32x16xf32>, vector<8x16xf32> -> vector<8x16xf32>
    %106 = arith.addf %58, %105 : vector<8x16xf32>
    %c0_58 = arith.constant 0 : index
    %c0_59 = arith.constant 0 : index
    %c0_60 = arith.constant 0 : index
    %107 = vector.load %arg14[%c0_58, %c0_59, %c0_60] : memref<2x1x16xf32, #tpu.memory_space<vmem>>, vector<1x1x16xf32>
    %108 = vector.shape_cast %107 : vector<1x1x16xf32> to vector<1x16xf32>
    %109 = vector.broadcast %108 : vector<1x16xf32> to vector<8x16xf32>
    %110 = arith.addf %106, %109 : vector<8x16xf32>
    %c1 = arith.constant 1 : index
    %c0_61 = arith.constant 0 : index
    %c0_62 = arith.constant 0 : index
    %111 = vector.load %arg7[%c1, %c0_61, %c0_62] : memref<2x1x16xf32, #tpu.memory_space<vmem>>, vector<1x1x16xf32>
    %112 = vector.shape_cast %111 : vector<1x1x16xf32> to vector<1x16xf32>
    %c1_63 = arith.constant 1 : index
    %c0_64 = arith.constant 0 : index
    %c0_65 = arith.constant 0 : index
    %113 = vector.load %arg8[%c1_63, %c0_64, %c0_65] : memref<2x1x16xf32, #tpu.memory_space<vmem>>, vector<1x1x16xf32>
    %114 = vector.shape_cast %113 : vector<1x1x16xf32> to vector<1x16xf32>
    %cst_66 = arith.constant dense<0.000000e+00> : vector<8xf32>
    %115 = vector.multi_reduction <add>, %110, %cst_66 [1] : vector<8x16xf32> to vector<8xf32>
    %116 = vector.shape_cast %115 : vector<8xf32> to vector<8x1xf32>
    %cst_67 = arith.constant 1.600000e+01 : f32
    %117 = vector.broadcast %cst_67 : f32 to vector<8x1xf32>
    %118 = arith.divf %116, %117 : vector<8x1xf32>
    %119 = vector.broadcast %118 : vector<8x1xf32> to vector<8x16xf32>
    %120 = arith.subf %110, %119 : vector<8x16xf32>
    %121 = arith.mulf %120, %120 : vector<8x16xf32>
    %cst_68 = arith.constant dense<0.000000e+00> : vector<8xf32>
    %122 = vector.multi_reduction <add>, %121, %cst_68 [1] : vector<8x16xf32> to vector<8xf32>
    %123 = vector.shape_cast %122 : vector<8xf32> to vector<8x1xf32>
    %cst_69 = arith.constant 1.600000e+01 : f32
    %124 = vector.broadcast %cst_69 : f32 to vector<8x1xf32>
    %125 = arith.divf %123, %124 : vector<8x1xf32>
    %cst_70 = arith.constant 9.99999974E-6 : f32
    %126 = vector.broadcast %cst_70 : f32 to vector<8x1xf32>
    %127 = arith.addf %125, %126 : vector<8x1xf32>
    %128 = math.rsqrt %127 : vector<8x1xf32>
    %129 = vector.broadcast %128 : vector<8x1xf32> to vector<8x16xf32>
    %130 = arith.mulf %120, %129 : vector<8x16xf32>
    %131 = vector.broadcast %112 : vector<1x16xf32> to vector<8x16xf32>
    %132 = arith.mulf %130, %131 : vector<8x16xf32>
    %133 = vector.broadcast %114 : vector<1x16xf32> to vector<8x16xf32>
    %134 = arith.addf %132, %133 : vector<8x16xf32>
    %c1_71 = arith.constant 1 : index
    %c0_72 = arith.constant 0 : index
    %c0_73 = arith.constant 0 : index
    %135 = vector.load %arg3[%c1_71, %c0_72, %c0_73] : memref<2x16x48xf32, #tpu.memory_space<vmem>>, vector<1x16x48xf32>
    %136 = vector.shape_cast %135 : vector<1x16x48xf32> to vector<16x48xf32>
    %cst_74 = arith.constant dense<0.000000e+00> : vector<8x48xf32>
    %137 = tpu.matmul %134, %136, %cst_74 {dimension_numbers = #tpu.dot_dimension_numbers<[1], [0], [0], [1], [0, 0, 1, 1], [], []>} : vector<8x16xf32>, vector<16x48xf32>, vector<8x48xf32> -> vector<8x48xf32>
    %c1_75 = arith.constant 1 : index
    %c0_76 = arith.constant 0 : index
    %c0_77 = arith.constant 0 : index
    %138 = vector.load %arg4[%c1_75, %c0_76, %c0_77] : memref<2x1x48xf32, #tpu.memory_space<vmem>>, vector<1x1x48xf32>
    %139 = vector.shape_cast %138 : vector<1x1x48xf32> to vector<1x48xf32>
    %140 = vector.broadcast %139 : vector<1x48xf32> to vector<8x48xf32>
    %141 = arith.addf %137, %140 : vector<8x48xf32>
    %142 = vector.extract_strided_slice %141 {offsets = [0, 0], sizes = [8, 16], strides = [1, 1]} : vector<8x48xf32> to vector<8x16xf32>
    %143 = vector.extract_strided_slice %141 {offsets = [0, 16], sizes = [8, 16], strides = [1, 1]} : vector<8x48xf32> to vector<8x16xf32>
    %144 = vector.extract_strided_slice %141 {offsets = [0, 32], sizes = [8, 16], strides = [1, 1]} : vector<8x48xf32> to vector<8x16xf32>
    %cst_78 = arith.constant dense<0.000000e+00> : vector<8x8xf32>
    %145 = tpu.matmul %142, %143, %cst_78 {dimension_numbers = #tpu.dot_dimension_numbers<[1], [1], [0], [0], [0, 0, 1, 0], [], []>} : vector<8x16xf32>, vector<8x16xf32>, vector<8x8xf32> -> vector<8x8xf32>
    %146 = vector.shape_cast %1 : vector<1x1x8xf32> to vector<1x8xf32>
    %147 = vector.broadcast %146 : vector<1x8xf32> to vector<8x8xf32>
    %148 = arith.addf %145, %147 : vector<8x8xf32>
    %cst_79 = arith.constant dense<0xFF800000> : vector<8xf32>
    %149 = vector.multi_reduction <maximumf>, %148, %cst_79 [1] : vector<8x8xf32> to vector<8xf32>
    %150 = vector.shape_cast %149 : vector<8xf32> to vector<8x1xf32>
    %151 = vector.broadcast %150 : vector<8x1xf32> to vector<8x8xf32>
    %152 = arith.subf %148, %151 : vector<8x8xf32>
    %153 = math.exp %152 : vector<8x8xf32>
    %cst_80 = arith.constant dense<0.000000e+00> : vector<8x16xf32>
    %154 = tpu.matmul %153, %144, %cst_80 {dimension_numbers = #tpu.dot_dimension_numbers<[1], [0], [0], [1], [0, 0, 1, 1], [], []>} : vector<8x8xf32>, vector<8x16xf32>, vector<8x16xf32> -> vector<8x16xf32>
    %cst_81 = arith.constant dense<0.000000e+00> : vector<8xf32>
    %155 = vector.multi_reduction <add>, %153, %cst_81 [1] : vector<8x8xf32> to vector<8xf32>
    %156 = vector.shape_cast %155 : vector<8xf32> to vector<8x1xf32>
    %157 = tpu.reciprocal %156 : vector<8x1xf32> -> vector<8x1xf32>
    %158 = vector.broadcast %157 : vector<8x1xf32> to vector<8x16xf32>
    %159 = arith.mulf %154, %158 : vector<8x16xf32>
    %c1_82 = arith.constant 1 : index
    %c0_83 = arith.constant 0 : index
    %c0_84 = arith.constant 0 : index
    %160 = vector.load %arg5[%c1_82, %c0_83, %c0_84] : memref<2x16x16xf32, #tpu.memory_space<vmem>>, vector<1x16x16xf32>
    %161 = vector.shape_cast %160 : vector<1x16x16xf32> to vector<16x16xf32>
    %cst_85 = arith.constant dense<0.000000e+00> : vector<8x16xf32>
    %162 = tpu.matmul %159, %161, %cst_85 {dimension_numbers = #tpu.dot_dimension_numbers<[1], [0], [0], [1], [0, 0, 1, 1], [], []>} : vector<8x16xf32>, vector<16x16xf32>, vector<8x16xf32> -> vector<8x16xf32>
    %163 = arith.addf %110, %162 : vector<8x16xf32>
    %c1_86 = arith.constant 1 : index
    %c0_87 = arith.constant 0 : index
    %c0_88 = arith.constant 0 : index
    %164 = vector.load %arg6[%c1_86, %c0_87, %c0_88] : memref<2x1x16xf32, #tpu.memory_space<vmem>>, vector<1x1x16xf32>
    %165 = vector.shape_cast %164 : vector<1x1x16xf32> to vector<1x16xf32>
    %166 = vector.broadcast %165 : vector<1x16xf32> to vector<8x16xf32>
    %167 = arith.addf %163, %166 : vector<8x16xf32>
    %c1_89 = arith.constant 1 : index
    %c0_90 = arith.constant 0 : index
    %c0_91 = arith.constant 0 : index
    %168 = vector.load %arg9[%c1_89, %c0_90, %c0_91] : memref<2x1x16xf32, #tpu.memory_space<vmem>>, vector<1x1x16xf32>
    %169 = vector.shape_cast %168 : vector<1x1x16xf32> to vector<1x16xf32>
    %c1_92 = arith.constant 1 : index
    %c0_93 = arith.constant 0 : index
    %c0_94 = arith.constant 0 : index
    %170 = vector.load %arg10[%c1_92, %c0_93, %c0_94] : memref<2x1x16xf32, #tpu.memory_space<vmem>>, vector<1x1x16xf32>
    %171 = vector.shape_cast %170 : vector<1x1x16xf32> to vector<1x16xf32>
    %cst_95 = arith.constant dense<0.000000e+00> : vector<8xf32>
    %172 = vector.multi_reduction <add>, %167, %cst_95 [1] : vector<8x16xf32> to vector<8xf32>
    %173 = vector.shape_cast %172 : vector<8xf32> to vector<8x1xf32>
    %cst_96 = arith.constant 1.600000e+01 : f32
    %174 = vector.broadcast %cst_96 : f32 to vector<8x1xf32>
    %175 = arith.divf %173, %174 : vector<8x1xf32>
    %176 = vector.broadcast %175 : vector<8x1xf32> to vector<8x16xf32>
    %177 = arith.subf %167, %176 : vector<8x16xf32>
    %178 = arith.mulf %177, %177 : vector<8x16xf32>
    %cst_97 = arith.constant dense<0.000000e+00> : vector<8xf32>
    %179 = vector.multi_reduction <add>, %178, %cst_97 [1] : vector<8x16xf32> to vector<8xf32>
    %180 = vector.shape_cast %179 : vector<8xf32> to vector<8x1xf32>
    %cst_98 = arith.constant 1.600000e+01 : f32
    %181 = vector.broadcast %cst_98 : f32 to vector<8x1xf32>
    %182 = arith.divf %180, %181 : vector<8x1xf32>
    %cst_99 = arith.constant 9.99999974E-6 : f32
    %183 = vector.broadcast %cst_99 : f32 to vector<8x1xf32>
    %184 = arith.addf %182, %183 : vector<8x1xf32>
    %185 = math.rsqrt %184 : vector<8x1xf32>
    %186 = vector.broadcast %185 : vector<8x1xf32> to vector<8x16xf32>
    %187 = arith.mulf %177, %186 : vector<8x16xf32>
    %188 = vector.broadcast %169 : vector<1x16xf32> to vector<8x16xf32>
    %189 = arith.mulf %187, %188 : vector<8x16xf32>
    %190 = vector.broadcast %171 : vector<1x16xf32> to vector<8x16xf32>
    %191 = arith.addf %189, %190 : vector<8x16xf32>
    %c1_100 = arith.constant 1 : index
    %c0_101 = arith.constant 0 : index
    %c0_102 = arith.constant 0 : index
    %192 = vector.load %arg11[%c1_100, %c0_101, %c0_102] : memref<2x16x32xf32, #tpu.memory_space<vmem>>, vector<1x16x32xf32>
    %193 = vector.shape_cast %192 : vector<1x16x32xf32> to vector<16x32xf32>
    %cst_103 = arith.constant dense<0.000000e+00> : vector<8x32xf32>
    %194 = tpu.matmul %191, %193, %cst_103 {dimension_numbers = #tpu.dot_dimension_numbers<[1], [0], [0], [1], [0, 0, 1, 1], [], []>} : vector<8x16xf32>, vector<16x32xf32>, vector<8x32xf32> -> vector<8x32xf32>
    %c1_104 = arith.constant 1 : index
    %c0_105 = arith.constant 0 : index
    %c0_106 = arith.constant 0 : index
    %195 = vector.load %arg12[%c1_104, %c0_105, %c0_106] : memref<2x1x32xf32, #tpu.memory_space<vmem>>, vector<1x1x32xf32>
    %196 = vector.shape_cast %195 : vector<1x1x32xf32> to vector<1x32xf32>
    %197 = vector.broadcast %196 : vector<1x32xf32> to vector<8x32xf32>
    %198 = arith.addf %194, %197 : vector<8x32xf32>
    %cst_107 = arith.constant 5.000000e-01 : f32
    %199 = vector.broadcast %cst_107 : f32 to vector<8x32xf32>
    %200 = arith.mulf %199, %198 : vector<8x32xf32>
    %cst_108 = arith.constant 4.471500e-02 : f32
    %201 = vector.broadcast %cst_108 : f32 to vector<8x32xf32>
    %202 = arith.mulf %201, %198 : vector<8x32xf32>
    %203 = arith.mulf %202, %198 : vector<8x32xf32>
    %204 = arith.mulf %203, %198 : vector<8x32xf32>
    %205 = arith.addf %198, %204 : vector<8x32xf32>
    %cst_109 = arith.constant 0.797884583 : f32
    %206 = vector.broadcast %cst_109 : f32 to vector<8x32xf32>
    %207 = arith.mulf %206, %205 : vector<8x32xf32>
    %208 = math.tanh %207 : vector<8x32xf32>
    %cst_110 = arith.constant 1.000000e+00 : f32
    %209 = vector.broadcast %cst_110 : f32 to vector<8x32xf32>
    %210 = arith.addf %209, %208 : vector<8x32xf32>
    %211 = arith.mulf %200, %210 : vector<8x32xf32>
    %c1_111 = arith.constant 1 : index
    %c0_112 = arith.constant 0 : index
    %c0_113 = arith.constant 0 : index
    %212 = vector.load %arg13[%c1_111, %c0_112, %c0_113] : memref<2x32x16xf32, #tpu.memory_space<vmem>>, vector<1x32x16xf32>
    %213 = vector.shape_cast %212 : vector<1x32x16xf32> to vector<32x16xf32>
    %cst_114 = arith.constant dense<0.000000e+00> : vector<8x16xf32>
    %214 = tpu.matmul %211, %213, %cst_114 {dimension_numbers = #tpu.dot_dimension_numbers<[1], [0], [0], [1], [0, 0, 1, 1], [], []>} : vector<8x32xf32>, vector<32x16xf32>, vector<8x16xf32> -> vector<8x16xf32>
    %215 = arith.addf %167, %214 : vector<8x16xf32>
    %c1_115 = arith.constant 1 : index
    %c0_116 = arith.constant 0 : index
    %c0_117 = arith.constant 0 : index
    %216 = vector.load %arg14[%c1_115, %c0_116, %c0_117] : memref<2x1x16xf32, #tpu.memory_space<vmem>>, vector<1x1x16xf32>
    %217 = vector.shape_cast %216 : vector<1x1x16xf32> to vector<1x16xf32>
    %218 = vector.broadcast %217 : vector<1x16xf32> to vector<8x16xf32>
    %219 = arith.addf %215, %218 : vector<8x16xf32>
    %c0_118 = arith.constant 0 : index
    %c0_119 = arith.constant 0 : index
    %220 = vector.load %arg15[%c0_118, %c0_119] : memref<16x32xf32, #tpu.memory_space<vmem>>, vector<16x32xf32>
    %cst_120 = arith.constant dense<0.000000e+00> : vector<8x32xf32>
    %221 = tpu.matmul %219, %220, %cst_120 {dimension_numbers = #tpu.dot_dimension_numbers<[1], [0], [0], [1], [0, 0, 1, 1], [], []>} : vector<8x16xf32>, vector<16x32xf32>, vector<8x32xf32> -> vector<8x32xf32>
    %c0_121 = arith.constant 0 : index
    %c0_122 = arith.constant 0 : index
    %222 = vector.load %arg17[%c0_121, %c0_122] : memref<1x32xf32, #tpu.memory_space<vmem>>, vector<1x32xf32>
    %223 = vector.broadcast %222 : vector<1x32xf32> to vector<8x32xf32>
    %224 = arith.addf %221, %223 : vector<8x32xf32>
    %225 = vector.extract_strided_slice %219 {offsets = [0, 0], sizes = [1, 16], strides = [1, 1]} : vector<8x16xf32> to vector<1x16xf32>
    %c0_123 = arith.constant 0 : index
    %c0_124 = arith.constant 0 : index
    %226 = vector.load %arg16[%c0_123, %c0_124] : memref<16x32xf32, #tpu.memory_space<vmem>>, vector<16x32xf32>
    %cst_125 = arith.constant dense<0.000000e+00> : vector<1x32xf32>
    %227 = tpu.matmul %225, %226, %cst_125 {dimension_numbers = #tpu.dot_dimension_numbers<[1], [0], [0], [1], [0, 0, 1, 1], [], []>} : vector<1x16xf32>, vector<16x32xf32>, vector<1x32xf32> -> vector<1x32xf32>
    %228 = vector.broadcast %227 : vector<1x32xf32> to vector<8x32xf32>
    %229 = arith.addf %224, %228 : vector<8x32xf32>
    %cst_126 = arith.constant 0.000000e+00 : f32
    %230 = vector.broadcast %cst_126 : f32 to vector<8x32xf32>
    %231 = arith.maximumf %229, %230 : vector<8x32xf32>
    %c0_127 = arith.constant 0 : index
    %c0_128 = arith.constant 0 : index
    %232 = vector.load %arg18[%c0_127, %c0_128] : memref<1x32xf32, #tpu.memory_space<vmem>>, vector<1x32xf32>
    %233 = vector.broadcast %232 : vector<1x32xf32> to vector<8x32xf32>
    %234 = arith.mulf %231, %233 : vector<8x32xf32>
    %cst_129 = arith.constant dense<0.000000e+00> : vector<8xf32>
    %235 = vector.multi_reduction <add>, %234, %cst_129 [1] : vector<8x32xf32> to vector<8xf32>
    %236 = vector.shape_cast %235 : vector<8xf32> to vector<8x1xf32>
    %c0_130 = arith.constant 0 : index
    %c0_131 = arith.constant 0 : index
    %237 = vector.load %arg19[%c0_130, %c0_131] : memref<1x1xf32, #tpu.memory_space<vmem>>, vector<1x1xf32>
    %238 = vector.broadcast %237 : vector<1x1xf32> to vector<8x1xf32>
    %239 = arith.addf %236, %238 : vector<8x1xf32>
    %c0_132 = arith.constant 0 : index
    %c0_133 = arith.constant 0 : index
    %c0_134 = arith.constant 0 : index
    %240 = vector.load %arg24[%c0_132, %c0_133, %c0_134] : memref<1x8x1xf32, #tpu.memory_space<vmem>>, vector<1x8x1xf32>
    %241 = vector.shape_cast %240 : vector<1x8x1xf32> to vector<8x1xf32>
    %242 = vector.shape_cast %239 : vector<8x1xf32> to vector<1x8x1xf32>
    tpu.vector_store %arg24[%c0_132, %c0_133, %c0_134], %242 {strides = array<i32>} : memref<1x8x1xf32, #tpu.memory_space<vmem>>, vector<1x8x1xf32>,
    %243 = vector.extract_strided_slice %219 {offsets = [0, 0], sizes = [1, 16], strides = [1, 1]} : vector<8x16xf32> to vector<1x16xf32>
    %c0_135 = arith.constant 0 : index
    %c0_136 = arith.constant 0 : index
    %244 = vector.load %arg20[%c0_135, %c0_136] : memref<16x32xf32, #tpu.memory_space<vmem>>, vector<16x32xf32>
    %cst_137 = arith.constant dense<0.000000e+00> : vector<1x32xf32>
    %245 = tpu.matmul %243, %244, %cst_137 {dimension_numbers = #tpu.dot_dimension_numbers<[1], [0], [0], [1], [0, 0, 1, 1], [], []>} : vector<1x16xf32>, vector<16x32xf32>, vector<1x32xf32> -> vector<1x32xf32>
    %c0_138 = arith.constant 0 : index
    %c0_139 = arith.constant 0 : index
    %246 = vector.load %arg21[%c0_138, %c0_139] : memref<1x32xf32, #tpu.memory_space<vmem>>, vector<1x32xf32>
    %247 = arith.addf %245, %246 : vector<1x32xf32>
    %cst_140 = arith.constant 0.000000e+00 : f32
    %248 = vector.broadcast %cst_140 : f32 to vector<1x32xf32>
    %249 = arith.maximumf %247, %248 : vector<1x32xf32>
    %c0_141 = arith.constant 0 : index
    %c0_142 = arith.constant 0 : index
    %250 = vector.load %arg22[%c0_141, %c0_142] : memref<32x4xf32, #tpu.memory_space<vmem>>, vector<32x4xf32>
    %cst_143 = arith.constant dense<0.000000e+00> : vector<1x4xf32>
    %251 = tpu.matmul %249, %250, %cst_143 {dimension_numbers = #tpu.dot_dimension_numbers<[1], [0], [0], [1], [0, 0, 1, 1], [], []>} : vector<1x32xf32>, vector<32x4xf32>, vector<1x4xf32> -> vector<1x4xf32>
    %c0_144 = arith.constant 0 : index
    %c0_145 = arith.constant 0 : index
    %252 = vector.load %arg23[%c0_144, %c0_145] : memref<1x4xf32, #tpu.memory_space<vmem>>, vector<1x4xf32>
    %253 = arith.addf %251, %252 : vector<1x4xf32>
    %c0_146 = arith.constant 0 : index
    %c0_147 = arith.constant 0 : index
    %c0_148 = arith.constant 0 : index
    %254 = vector.load %arg25[%c0_146, %c0_147, %c0_148] : memref<1x1x4xf32, #tpu.memory_space<vmem>>, vector<1x1x4xf32>
    %255 = vector.shape_cast %254 : vector<1x1x4xf32> to vector<1x4xf32>
    %256 = vector.shape_cast %253 : vector<1x4xf32> to vector<1x1x4xf32>
    tpu.vector_store %arg25[%c0_146, %c0_147, %c0_148], %256 {strides = array<i32>} : memref<1x1x4xf32, #tpu.memory_space<vmem>>, vector<1x1x4xf32>,
    return
  }
  func.func @transform_0(%arg0: i32) -> (i32, i32) {
    %c0_i32 = arith.constant 0 : i32
    %c0_i32_0 = arith.constant 0 : i32
    return %arg0, %c0_i32 : i32, i32
  }
  func.func @transform_1(%arg0: i32) -> (i32, i32, i32) {
    %c0_i32 = arith.constant 0 : i32
    %c0_i32_0 = arith.constant 0 : i32
    %c0_i32_1 = arith.constant 0 : i32
    return %arg0, %c0_i32, %c0_i32_0 : i32, i32, i32
  }
  func.func @transform_2(%arg0: i32) -> (i32, i32, i32) {
    %c0_i32 = arith.constant 0 : i32
    %c0_i32_0 = arith.constant 0 : i32
    %c0_i32_1 = arith.constant 0 : i32
    %c0_i32_2 = arith.constant 0 : i32
    return %c0_i32, %c0_i32_0, %c0_i32_1 : i32, i32, i32
  }
  func.func @transform_3(%arg0: i32) -> (i32, i32, i32) {
    %c0_i32 = arith.constant 0 : i32
    %c0_i32_0 = arith.constant 0 : i32
    %c0_i32_1 = arith.constant 0 : i32
    %c0_i32_2 = arith.constant 0 : i32
    return %c0_i32, %c0_i32_0, %c0_i32_1 : i32, i32, i32
  }
  func.func @transform_4(%arg0: i32) -> (i32, i32, i32) {
    %c0_i32 = arith.constant 0 : i32
    %c0_i32_0 = arith.constant 0 : i32
    %c0_i32_1 = arith.constant 0 : i32
    %c0_i32_2 = arith.constant 0 : i32
    return %c0_i32, %c0_i32_0, %c0_i32_1 : i32, i32, i32
  }
  func.func @transform_5(%arg0: i32) -> (i32, i32, i32) {
    %c0_i32 = arith.constant 0 : i32
    %c0_i32_0 = arith.constant 0 : i32
    %c0_i32_1 = arith.constant 0 : i32
    %c0_i32_2 = arith.constant 0 : i32
    return %c0_i32, %c0_i32_0, %c0_i32_1 : i32, i32, i32
  }
  func.func @transform_6(%arg0: i32) -> (i32, i32, i32) {
    %c0_i32 = arith.constant 0 : i32
    %c0_i32_0 = arith.constant 0 : i32
    %c0_i32_1 = arith.constant 0 : i32
    %c0_i32_2 = arith.constant 0 : i32
    return %c0_i32, %c0_i32_0, %c0_i32_1 : i32, i32, i32
  }
  func.func @transform_7(%arg0: i32) -> (i32, i32, i32) {
    %c0_i32 = arith.constant 0 : i32
    %c0_i32_0 = arith.constant 0 : i32
    %c0_i32_1 = arith.constant 0 : i32
    %c0_i32_2 = arith.constant 0 : i32
    return %c0_i32, %c0_i32_0, %c0_i32_1 : i32, i32, i32
  }
  func.func @transform_8(%arg0: i32) -> (i32, i32, i32) {
    %c0_i32 = arith.constant 0 : i32
    %c0_i32_0 = arith.constant 0 : i32
    %c0_i32_1 = arith.constant 0 : i32
    %c0_i32_2 = arith.constant 0 : i32
    return %c0_i32, %c0_i32_0, %c0_i32_1 : i32, i32, i32
  }
  func.func @transform_9(%arg0: i32) -> (i32, i32, i32) {
    %c0_i32 = arith.constant 0 : i32
    %c0_i32_0 = arith.constant 0 : i32
    %c0_i32_1 = arith.constant 0 : i32
    %c0_i32_2 = arith.constant 0 : i32
    return %c0_i32, %c0_i32_0, %c0_i32_1 : i32, i32, i32
  }
  func.func @transform_10(%arg0: i32) -> (i32, i32, i32) {
    %c0_i32 = arith.constant 0 : i32
    %c0_i32_0 = arith.constant 0 : i32
    %c0_i32_1 = arith.constant 0 : i32
    %c0_i32_2 = arith.constant 0 : i32
    return %c0_i32, %c0_i32_0, %c0_i32_1 : i32, i32, i32
  }
  func.func @transform_11(%arg0: i32) -> (i32, i32, i32) {
    %c0_i32 = arith.constant 0 : i32
    %c0_i32_0 = arith.constant 0 : i32
    %c0_i32_1 = arith.constant 0 : i32
    %c0_i32_2 = arith.constant 0 : i32
    return %c0_i32, %c0_i32_0, %c0_i32_1 : i32, i32, i32
  }
  func.func @transform_12(%arg0: i32) -> (i32, i32, i32) {
    %c0_i32 = arith.constant 0 : i32
    %c0_i32_0 = arith.constant 0 : i32
    %c0_i32_1 = arith.constant 0 : i32
    %c0_i32_2 = arith.constant 0 : i32
    return %c0_i32, %c0_i32_0, %c0_i32_1 : i32, i32, i32
  }
  func.func @transform_13(%arg0: i32) -> (i32, i32, i32) {
    %c0_i32 = arith.constant 0 : i32
    %c0_i32_0 = arith.constant 0 : i32
    %c0_i32_1 = arith.constant 0 : i32
    %c0_i32_2 = arith.constant 0 : i32
    return %c0_i32, %c0_i32_0, %c0_i32_1 : i32, i32, i32
  }
  func.func @transform_14(%arg0: i32) -> (i32, i32) {
    %c0_i32 = arith.constant 0 : i32
    %c0_i32_0 = arith.constant 0 : i32
    %c0_i32_1 = arith.constant 0 : i32
    return %c0_i32, %c0_i32_0 : i32, i32
  }
  func.func @transform_15(%arg0: i32) -> (i32, i32) {
    %c0_i32 = arith.constant 0 : i32
    %c0_i32_0 = arith.constant 0 : i32
    %c0_i32_1 = arith.constant 0 : i32
    return %c0_i32, %c0_i32_0 : i32, i32
  }
  func.func @transform_16(%arg0: i32) -> (i32, i32) {
    %c0_i32 = arith.constant 0 : i32
    %c0_i32_0 = arith.constant 0 : i32
    %c0_i32_1 = arith.constant 0 : i32
    return %c0_i32, %c0_i32_0 : i32, i32
  }
  func.func @transform_17(%arg0: i32) -> (i32, i32) {
    %c0_i32 = arith.constant 0 : i32
    %c0_i32_0 = arith.constant 0 : i32
    %c0_i32_1 = arith.constant 0 : i32
    return %c0_i32, %c0_i32_0 : i32, i32
  }
  func.func @transform_18(%arg0: i32) -> (i32, i32) {
    %c0_i32 = arith.constant 0 : i32
    %c0_i32_0 = arith.constant 0 : i32
    %c0_i32_1 = arith.constant 0 : i32
    return %c0_i32, %c0_i32_0 : i32, i32
  }
  func.func @transform_19(%arg0: i32) -> (i32, i32) {
    %c0_i32 = arith.constant 0 : i32
    %c0_i32_0 = arith.constant 0 : i32
    %c0_i32_1 = arith.constant 0 : i32
    return %c0_i32, %c0_i32_0 : i32, i32
  }
  func.func @transform_20(%arg0: i32) -> (i32, i32) {
    %c0_i32 = arith.constant 0 : i32
    %c0_i32_0 = arith.constant 0 : i32
    %c0_i32_1 = arith.constant 0 : i32
    return %c0_i32, %c0_i32_0 : i32, i32
  }
  func.func @transform_21(%arg0: i32) -> (i32, i32) {
    %c0_i32 = arith.constant 0 : i32
    %c0_i32_0 = arith.constant 0 : i32
    %c0_i32_1 = arith.constant 0 : i32
    return %c0_i32, %c0_i32_0 : i32, i32
  }
  func.func @transform_22(%arg0: i32) -> (i32, i32) {
    %c0_i32 = arith.constant 0 : i32
    %c0_i32_0 = arith.constant 0 : i32
    %c0_i32_1 = arith.constant 0 : i32
    return %c0_i32, %c0_i32_0 : i32, i32
  }
  func.func @transform_23(%arg0: i32) -> (i32, i32, i32) {
    %c0_i32 = arith.constant 0 : i32
    %c0_i32_0 = arith.constant 0 : i32
    %c0_i32_1 = arith.constant 0 : i32
    return %arg0, %c0_i32, %c0_i32_0 : i32, i32, i32
  }
  func.func @transform_24(%arg0: i32) -> (i32, i32, i32) {
    %c0_i32 = arith.constant 0 : i32
    %c0_i32_0 = arith.constant 0 : i32
    %c0_i32_1 = arith.constant 0 : i32
    return %arg0, %c0_i32, %c0_i32_0 : i32, i32, i32
  }
}

</mosaic_0001>

<bundles_post_ra>
// kernel: tpu_custom_call.1
= control target key start
LH: loop header
LB: loop body
LE: loop exit
PB: predicated region body
PF: predicated region fallthrough
CT: control target
= control target key end

     0   :  { %s4191_s0 = inlined_call_operand.vmem [shape: f32[16,16], index: 0, kind: input, shape index: {}]   ;;  %s4192_s1 = inlined_call_operand.hbm [shape: f32[2,1,8], index: 1, kind: input, shape index: {}]   ;;  %s4193_s2 = inlined_call_operand.vmem [shape: f32[2,16,48], index: 2, kind: input, shape index: {}]   ;;  %s4194_s3 = inlined_call_operand.hbm [shape: f32[2,1,48], index: 3, kind: input, shape index: {}]   ;;  %s4195_s4 = inlined_call_operand.vmem [shape: f32[2,16,16], index: 4, kind: input, shape index: {}]   ;;  %s4196_s5 = inlined_call_operand.hbm [shape: f32[2,1,16], index: 5, kind: input, shape index: {}]   ;;  %s4197_s6 = inlined_call_operand.hbm [shape: f32[2,1,16], index: 6, kind: input, shape index: {}]   ;;  %s4198_s7 = inlined_call_operand.hbm [shape: f32[2,1,16], index: 7, kind: input, shape index: {}]   ;;  %s4199_s8 = inlined_call_operand.hbm [shape: f32[2,1,16], index: 8, kind: input, shape index: {}]   ;;  %s4200_s9 = inlined_call_operand.hbm [shape: f32[2,1,16], index: 9, kind: input, shape index: {}]   ;;  %s4201_s10 = inlined_call_operand.vmem [shape: f32[2,16,32], index: 10, kind: input, shape index: {}]   ;;  %s4202_s11 = inlined_call_operand.hbm [shape: f32[2,1,32], index: 11, kind: input, shape index: {}]   ;;  %s4203_s12 = inlined_call_operand.vmem [shape: f32[2,32,16], index: 12, kind: input, shape index: {}]   ;;  %s4204_s13 = inlined_call_operand.hbm [shape: f32[2,1,16], index: 13, kind: input, shape index: {}]   ;;  %s4205_s14 = inlined_call_operand.vmem [shape: f32[16,32], index: 14, kind: input, shape index: {}]   ;;  %s4206_s15 = inlined_call_operand.vmem [shape: f32[16,32], index: 15, kind: input, shape index: {}]   ;;  %s4207_s16 = inlined_call_operand.hbm [shape: f32[1,32], index: 16, kind: input, shape index: {}]   ;;  %s4208_s17 = inlined_call_operand.vmem [shape: f32[1,32], index: 17, kind: input, shape index: {}]   ;;  %s4209_s18 = inlined_call_operand.<no memory space> [shape: f32[1,1], index: 18, kind: input, shape index: {}]   ;;  %s4210_s19 = inlined_call_operand.vmem [shape: f32[16,32], index: 19, kind: input, shape index: {}]   ;;  %s4211_s20 = inlined_call_operand.vmem [shape: f32[1,32], index: 20, kind: input, shape index: {}]   ;;  %s4212_s21 = inlined_call_operand.vmem [shape: f32[32,4], index: 21, kind: input, shape index: {}]   ;;  %s4213_s22 = inlined_call_operand.vmem [shape: f32[1,4], index: 22, kind: input, shape index: {}]   ;;  %s4214_s23 = inlined_call_operand.vmem [shape: f32[2,8,1], index: 23, kind: output, shape index: {0}]   ;;  %s4215_s24 = inlined_call_operand.hbm [shape: f32[2,1,4], index: 24, kind: output, shape index: {1}]  }
   0x1   :  { %4239 = sst [smem:[#allocation28_spill]] %s4191_s0  ;;  %v30_v0 = vstv %s4209_s18 }
   0x2   :  { %4240 = sst [smem:[#allocation29_spill]] %s4192_s1  ;;  %31 = vst [vmem:[#allocation2] sm:$0x1] %v30_v0 }
   0x3   :  { %4241 = sst [smem:[#allocation30_spill]] %s4193_s2 }
   0x4   :  { %4242 = sst [smem:[#allocation31_spill]] %s4194_s3 }
   0x5   :  { %4243 = sst [smem:[#allocation32_spill]] %s4195_s4 }
   0x6   :  { %4244 = sst [smem:[#allocation33_spill]] %s4196_s5 }
   0x7   :  { %4245 = sst [smem:[#allocation34_spill]] %s4197_s6 }
   0x8   :  { %4246 = sst [smem:[#allocation35_spill]] %s4198_s7 }
   0x9   :  { %4247 = sst [smem:[#allocation36_spill]] %s4199_s8 }
   0xa   :  { %4248 = sst [smem:[#allocation37_spill]] %s4200_s9 }
   0xb   :  { %4249 = sst [smem:[#allocation38_spill]] %s4201_s10 }
   0xc   :  { %4250 = sst [smem:[#allocation39_spill]] %s4202_s11 }
   0xd   :  { %4251 = sst [smem:[#allocation40_spill]] %s4206_s15 }
   0xe   :  { %4252 = sst [smem:[#allocation41_spill]] %s4208_s17 }
   0xf   :  { %4253 = sst [smem:[#allocation42_spill]] %s4210_s19 }
  0x10   :  { %4254 = sst [smem:[#allocation43_spill]] %s4211_s20 }
  0x11   :  { %4255 = sst [smem:[#allocation44_spill]] %s4212_s21 }
  0x12   :  { %4256 = sst [smem:[#allocation45_spill]] %s4213_s22 }
  0x13   :  { %4257 = sst [smem:[#allocation46_spill]] %s4214_s23 }
  0x14   :  { %4258 = sst [smem:[#allocation47_spill]] %s4215_s24 }
  0x15   :  { %32 = vsyncpa [#allocation4], 0 }
  0x16   :  { %34 = vsyncpa [#allocation4 + $0x1], 0 }
  0x17   :  { %35 = vsyncpa [#allocation7], 0 }
  0x18   :  { %36 = vsyncpa [#allocation10], 0 }
  0x19   :  { %37 = vsyncpa [#allocation13], 0 }
  0x1a   :  { %38 = vsyncpa [#allocation16], 0 }
  0x1b   :  { %39 = vsyncpa [#allocation19], 0 }
  0x1c   :  { %40 = vsyncpa [#allocation5], 0 }
  0x1d   :  { %42 = vsyncpa [#allocation5 + $0x1], 0  ;;  %s3569_s27 = smov 0   ;;  %s3571_s28 = smov 0  }
  0x1e   :  { %s3573_s6 = smov 0   ;;  %s3575_s2 = smov 0  }
  0x1f LB: > { %s3423_s18 = smov [#allocation6]   ;;  %s3590_s0 = sadd.s32 4294967295, %s3421_s2   ;;  %s3421_s2 = sphi %s3575_s2, %s4306_s2   ;;  %s3417_s6 = sphi %s3573_s6, %s4305_s6   ;;  %s3413_s28 = sphi %s3571_s28, %s4304_s28   ;;  %s3409_s27 = sphi %s3569_s27, %s4303_s27  }
  0x20   : > { %s613_s29 = sshll.u32 %s3423_s18, 4  ;;  %p2603_p0 = scmp.ge.s32.totalorder %s3421_s2, 1  ;;  %s3595_s29 = int_to_ptr.vmem [resolvable:$true] %s613_s29 }
  0x21   : > { %p4230_p1 = scmp.eq.s32.totalorder %s3590_s0, 0  ;;  %p598_p2 = scmp.lt.s32.totalorder %s3421_s2, 3 }
  0x22   : > { %s3424_s30 = smov [#allocation9]   ;;  %s3425_s8 = smov [#allocation12]  }
  0x23   : > { %p3597_p3 = pnand %p2603_p0, %p598_p2  ;;  %s642_s3 = sshll.u32 %s3424_s30, 4  ;;  %s3610_s3 = int_to_ptr.vmem [resolvable:$true] %s642_s3 }
  0x24   : > { %s668_s4 = sshll.u32 %s3425_s8, 4  ;;  %s4261_s26 = sld [smem:[#allocation31_spill]]  ;;  %s3612_s4 = int_to_ptr.vmem [resolvable:$true] %s668_s4 }
  0x25   : > { %s4259_s7 = scalar_select %p3597_p3, 1, 0 }
  0x26   : > { %p2929_p5 = pneg %p3597_p3 }
  0x28   : > { %p3606_p6 = pnand %p2929_p5, %p4230_p1 }
  0x2a   : > { %s3053_s18 = scalar_lea.hbm %s4261_s26, 32  ;;  %p3622_p8 = pneg %p3606_p6 }
  0x2b   : > { %p3054_p7 = scmp.ne.s32.totalorder %s4261_s26, %s3053_s18  ;;  %p3060_p11 = scmp.lt.u32.totalorder %s3053_s18, %s4261_s26 }
  0x2d   : > { %p3056_p9 = pnand %p3622_p8, %p3054_p7 }
  0x2f   : > { %p3057_p10 = pneg %p3056_p9 }
  0x31   : > { %p3062_p12 = pnand %p3060_p11, %p3057_p10 }
  0x33   : > { %3065 = shalt.err (!%p3062_p12)
}
  0x34   : > { %s3066_s22 = scalar_lea.vmem %s3595_s29, 32  ;;  %p3074_p5 = scmp.lt.s32.totalorder %s3595_s29, %s3595_s29 }
  0x35   : > { %p3067_p13 = scmp.ne.s32.totalorder %s3595_s29, %s3066_s22  ;;  %p3075_p4 = scmp.lt.s32.totalorder %s3066_s22, %s3066_s22 }
  0x37   : > { %p3069_p0 = pnand %p3067_p13, %p3622_p8  ;;  %p3076_p7 = por %p3075_p4, %p3074_p5 }
  0x39   : > { %p3070_p2 = pneg %p3069_p0 }
  0x3b   : > { %p3077_p9 = pnand %p3076_p7, %p3070_p2 }
  0x3d   : > { %3080 = shalt.err (!%p3077_p9)
}
  0x3e   : > { %s3426_s24 = smov 16   ;;  %s3427_s23 = smov 1  }
  0x3f   : > { %2932 = dma.hbm_to_vmem [thread:$0]  (!%p3606_p6), %s4261_s26, 32, %s3595_s29, [#allocation7], %s3426_s24, %s3426_s24, %s3427_s23  }
  0x40   : > { %s4263_s17 = sld [smem:[#allocation34_spill]] }
  0x46   : > { %s3081_s22 = scalar_lea.hbm %s4263_s17, 32 }
  0x47   : > { %p3082_p4 = scmp.ne.s32.totalorder %s4263_s17, %s3081_s22  ;;  %p3088_p12 = scmp.lt.u32.totalorder %s3081_s22, %s4263_s17 }
  0x49   : > { %p3084_p10 = pnand %p3082_p4, %p3622_p8 }
  0x4b   : > { %p3085_p11 = pneg %p3084_p10 }
  0x4d   : > { %p3090_p13 = pnand %p3088_p12, %p3085_p11 }
  0x4f   : > { %3093 = shalt.err (!%p3090_p13)
}
  0x50   : > { %s3094_s29 = scalar_lea.vmem %s3610_s3, 32  ;;  %p3102_p7 = scmp.lt.s32.totalorder %s3610_s3, %s3610_s3 }
  0x51   : > { %p3095_p0 = scmp.ne.s32.totalorder %s3610_s3, %s3094_s29  ;;  %p3103_p9 = scmp.lt.s32.totalorder %s3094_s29, %s3094_s29 }
  0x53   : > { %p3097_p2 = pnand %p3095_p0, %p3622_p8  ;;  %p3104_p4 = por %p3103_p9, %p3102_p7 }
  0x55   : > { %p3098_p5 = pneg %p3097_p2 }
  0x57   : > { %p3105_p10 = pnand %p3104_p4, %p3098_p5 }
  0x59   : > { %3108 = shalt.err (!%p3105_p10)
}
  0x5a   : > { %2938 = dma.hbm_to_vmem [thread:$0]  (!%p3606_p6), %s4263_s17, 32, %s3610_s3, [#allocation10], %s3426_s24, %s3426_s24, %s3427_s23  }
  0x5b   : > { %s4264_s1 = sld [smem:[#allocation36_spill]] }
  0x61   : > { %s3109_s5 = scalar_lea.hbm %s4264_s1, 32 }
  0x62   : > { %p3110_p11 = scmp.ne.s32.totalorder %s4264_s1, %s3109_s5  ;;  %p3116_p0 = scmp.lt.u32.totalorder %s3109_s5, %s4264_s1 }
  0x64   : > { %p3112_p12 = pnand %p3110_p11, %p3622_p8 }
  0x66   : > { %p3113_p13 = pneg %p3112_p12 }
  0x68   : > { %p3118_p2 = pnand %p3116_p0, %p3113_p13 }
  0x6a   : > { %3121 = shalt.err (!%p3118_p2)
}
  0x6b   : > { %s3122_s3 = scalar_lea.vmem %s3612_s4, 32  ;;  %p3130_p4 = scmp.lt.s32.totalorder %s3612_s4, %s3612_s4 }
  0x6c   : > { %p3123_p5 = scmp.ne.s32.totalorder %s3612_s4, %s3122_s3  ;;  %p3131_p10 = scmp.lt.s32.totalorder %s3122_s3, %s3122_s3 }
  0x6e   : > { %p3125_p7 = pnand %p3123_p5, %p3622_p8  ;;  %p3132_p11 = por %p3131_p10, %p3130_p4 }
  0x70   : > { %p3126_p9 = pneg %p3125_p7 }
  0x72   : > { %p3133_p12 = pnand %p3132_p11, %p3126_p9 }
  0x74   : > { %3136 = shalt.err (!%p3133_p12)
}
  0x75   : > { %2944 = dma.hbm_to_vmem [thread:$0]  (!%p3606_p6), %s4264_s1, 32, %s3612_s4, [#allocation13], %s3426_s24, %s3426_s24, %s3427_s23  }
  0x76   : > { %s3428_s20 = smov [#allocation15]   ;;  %s3429_s5 = smov [#allocation8]  }
  0x77   : > { %s697_s21 = sshll.u32 %s3428_s20, 4  ;;  %s629_s18 = sshll.u32 %s3429_s5, 4  ;;  %s698_s21 = int_to_ptr.vmem [resolvable:$true] %s697_s21  ;;  %s630_s18 = int_to_ptr.vmem [resolvable:$true] %s629_s18 }
  0x78   : > { %s4265_s11 = sld [smem:[#allocation39_spill]] }
  0x7e   : > { %s3137_s29 = scalar_lea.hbm %s4265_s11, 32 }
  0x7f   : > { %p3138_p13 = scmp.ne.s32.totalorder %s4265_s11, %s3137_s29  ;;  %p3144_p5 = scmp.lt.u32.totalorder %s3137_s29, %s4265_s11 }
  0x81   : > { %p3140_p0 = pnand %p3138_p13, %p3622_p8 }
  0x83   : > { %p3141_p2 = pneg %p3140_p0 }
  0x85   : > { %p3146_p7 = pnand %p3144_p5, %p3141_p2 }
  0x87   : > { %3149 = shalt.err (!%p3146_p7)
}
  0x88   : > { %s3150_s4 = scalar_lea.vmem %s698_s21, 32  ;;  %p3158_p11 = scmp.lt.s32.totalorder %s698_s21, %s698_s21 }
  0x89   : > { %p3151_p9 = scmp.ne.s32.totalorder %s698_s21, %s3150_s4  ;;  %p3159_p12 = scmp.lt.s32.totalorder %s3150_s4, %s3150_s4 }
  0x8b   : > { %p3153_p4 = pnand %p3151_p9, %p3622_p8  ;;  %p3160_p1 = por %p3159_p12, %p3158_p11 }
  0x8d   : > { %p3154_p10 = pneg %p3153_p4 }
  0x8f   : > { %p3161_p3 = pnand %p3160_p1, %p3154_p10 }
  0x91   : > { %3164 = shalt.err (!%p3161_p3)
}
  0x92   : > { %2950 = dma.hbm_to_vmem [thread:$0]  (!%p3606_p6), %s4265_s11, 32, %s698_s21, [#allocation16], %s3426_s24, %s3426_s24, %s3427_s23  }
  0x93   : > { %s4266_s5 = sld [smem:[#allocation33_spill]] }
  0x99   : > { %s3165_s8 = scalar_lea.hbm %s4266_s5, 32 }
  0x9a   : > { %p3166_p1 = scmp.ne.s32.totalorder %s4266_s5, %s3165_s8  ;;  %p3172_p0 = scmp.lt.u32.totalorder %s3165_s8, %s4266_s5 }
  0x9c   : > { %p3168_p3 = pnand %p3166_p1, %p3622_p8 }
  0x9e   : > { %p3169_p13 = pneg %p3168_p3 }
  0xa0   : > { %p3174_p2 = pnand %p3172_p0, %p3169_p13 }
  0xa2   : > { %3177 = shalt.err (!%p3174_p2)
}
  0xa3   : > { %s3178_s4 = scalar_lea.vmem %s630_s18, 32  ;;  %p3186_p4 = scmp.lt.s32.totalorder %s630_s18, %s630_s18 }
  0xa4   : > { %p3179_p5 = scmp.ne.s32.totalorder %s630_s18, %s3178_s4  ;;  %p3187_p10 = scmp.lt.s32.totalorder %s3178_s4, %s3178_s4 }
  0xa6   : > { %p3181_p7 = pnand %p3179_p5, %p3622_p8  ;;  %p3188_p11 = por %p3187_p10, %p3186_p4 }
  0xa8   : > { %p3182_p9 = pneg %p3181_p7 }
  0xaa   : > { %p3189_p12 = pnand %p3188_p11, %p3182_p9 }
  0xac   : > { %3192 = shalt.err (!%p3189_p12)
}
  0xad   : > { %2935 = dma.hbm_to_vmem [thread:$0]  (!%p3606_p6), %s4266_s5, 32, %s630_s18, [#allocation7], %s3426_s24, %s3426_s24, %s3427_s23  }
  0xae   : > { %s3430_s26 = smov [#allocation11]   ;;  %s3431_s20 = smov [#allocation14]  }
  0xaf   : > { %s655_s19 = sshll.u32 %s3430_s26, 4  ;;  %s681_s8 = sshll.u32 %s3431_s20, 4  ;;  %s656_s19 = int_to_ptr.vmem [resolvable:$true] %s655_s19  ;;  %s682_s8 = int_to_ptr.vmem [resolvable:$true] %s681_s8 }
  0xb0   : > { %s4267_s3 = sld [smem:[#allocation35_spill]] }
  0xb6   : > { %s3193_s15 = scalar_lea.hbm %s4267_s3, 32 }
  0xb7   : > { %p3194_p1 = scmp.ne.s32.totalorder %s4267_s3, %s3193_s15  ;;  %p3200_p0 = scmp.lt.u32.totalorder %s3193_s15, %s4267_s3 }
  0xb9   : > { %p3196_p3 = pnand %p3194_p1, %p3622_p8 }
  0xbb   : > { %p3197_p13 = pneg %p3196_p3 }
  0xbd   : > { %p3202_p2 = pnand %p3200_p0, %p3197_p13 }
  0xbf   : > { %3205 = shalt.err (!%p3202_p2)
}
  0xc0   : > { %s3206_s18 = scalar_lea.vmem %s656_s19, 32  ;;  %p3214_p4 = scmp.lt.s32.totalorder %s656_s19, %s656_s19 }
  0xc1   : > { %p3207_p5 = scmp.ne.s32.totalorder %s656_s19, %s3206_s18  ;;  %p3215_p10 = scmp.lt.s32.totalorder %s3206_s18, %s3206_s18 }
  0xc3   : > { %p3209_p7 = pnand %p3207_p5, %p3622_p8  ;;  %p3216_p11 = por %p3215_p10, %p3214_p4 }
  0xc5   : > { %p3210_p9 = pneg %p3209_p7 }
  0xc7   : > { %p3217_p12 = pnand %p3216_p11, %p3210_p9 }
  0xc9   : > { %3220 = shalt.err (!%p3217_p12)
}
  0xca   : > { %2941 = dma.hbm_to_vmem [thread:$0]  (!%p3606_p6), %s4267_s3, 32, %s656_s19, [#allocation10], %s3426_s24, %s3426_s24, %s3427_s23  }
  0xcb   : > { %s4268_s9 = sld [smem:[#allocation37_spill]] }
  0xd1   : > { %s3221_s20 = scalar_lea.hbm %s4268_s9, 32 }
  0xd2   : > { %p3222_p1 = scmp.ne.s32.totalorder %s4268_s9, %s3221_s20  ;;  %p3228_p0 = scmp.lt.u32.totalorder %s3221_s20, %s4268_s9 }
  0xd4   : > { %p3224_p3 = pnand %p3222_p1, %p3622_p8 }
  0xd6   : > { %p3225_p13 = pneg %p3224_p3 }
  0xd8   : > { %p3230_p2 = pnand %p3228_p0, %p3225_p13 }
  0xda   : > { %3233 = shalt.err (!%p3230_p2)
}
  0xdb   : > { %s3234_s21 = scalar_lea.vmem %s682_s8, 32  ;;  %p3242_p4 = scmp.lt.s32.totalorder %s682_s8, %s682_s8 }
  0xdc   : > { %p3235_p5 = scmp.ne.s32.totalorder %s682_s8, %s3234_s21  ;;  %p3243_p10 = scmp.lt.s32.totalorder %s3234_s21, %s3234_s21 }
  0xde   : > { %p3237_p7 = pnand %p3235_p5, %p3622_p8  ;;  %p3244_p11 = por %p3243_p10, %p3242_p4 }
  0xe0   : > { %p3238_p9 = pneg %p3237_p7 }
  0xe2   : > { %p3245_p12 = pnand %p3244_p11, %p3238_p9 }
  0xe4   : > { %3248 = shalt.err (!%p3245_p12)
}
  0xe5   : > { %2947 = dma.hbm_to_vmem [thread:$0]  (!%p3606_p6), %s4268_s9, 32, %s682_s8, [#allocation13], %s3426_s24, %s3426_s24, %s3427_s23  }
  0xe6   : > { %s3432_s11 = smov [#allocation17]   ;;  %s3433_s17 = smov [#allocation18]  }
  0xe7   : > { %s713_s1 = sshll.u32 %s3432_s11, 4  ;;  %s733_s26 = sshll.u32 %s3433_s17, 4  ;;  %s714_s1 = int_to_ptr.vmem [resolvable:$true] %s713_s1  ;;  %s734_s26 = int_to_ptr.vmem [resolvable:$true] %s733_s26 }
  0xe8   : > { %s3249_s29 = scalar_lea.hbm %s4204_s13, 32 }
  0xe9   : > { %p3250_p1 = scmp.ne.s32.totalorder %s4204_s13, %s3249_s29  ;;  %p3256_p0 = scmp.lt.u32.totalorder %s3249_s29, %s4204_s13 }
  0xeb   : > { %p3252_p3 = pnand %p3250_p1, %p3622_p8 }
  0xed   : > { %p3253_p13 = pneg %p3252_p3 }
  0xef   : > { %p3258_p2 = pnand %p3256_p0, %p3253_p13 }
  0xf1   : > { %3261 = shalt.err (!%p3258_p2)
}
  0xf2   : > { %s3262_s8 = scalar_lea.vmem %s714_s1, 32  ;;  %p3270_p4 = scmp.lt.s32.totalorder %s714_s1, %s714_s1 }
  0xf3   : > { %p3263_p5 = scmp.ne.s32.totalorder %s714_s1, %s3262_s8  ;;  %p3271_p10 = scmp.lt.s32.totalorder %s3262_s8, %s3262_s8 }
  0xf5   : > { %p3265_p7 = pnand %p3263_p5, %p3622_p8  ;;  %p3272_p11 = por %p3271_p10, %p3270_p4 }
  0xf7   : > { %p3266_p9 = pneg %p3265_p7 }
  0xf9   : > { %p3273_p12 = pnand %p3272_p11, %p3266_p9 }
  0xfb   : > { %3276 = shalt.err (!%p3273_p12)
}
  0xfc   : > { %2953 = dma.hbm_to_vmem [thread:$0]  (!%p3606_p6), %s4204_s13, 32, %s714_s1, [#allocation16], %s3426_s24, %s3426_s24, %s3427_s23  }
  0xfd   : > { %s3277_s22 = scalar_lea.hbm %s4207_s16, 16 }
  0xfe   : > { %p3278_p1 = scmp.ne.s32.totalorder %s4207_s16, %s3277_s22  ;;  %p3284_p0 = scmp.lt.u32.totalorder %s3277_s22, %s4207_s16 }
 0x100   : > { %p3280_p3 = pnand %p3278_p1, %p3622_p8 }
 0x102   : > { %p3281_p13 = pneg %p3280_p3 }
 0x104   : > { %p3286_p2 = pnand %p3284_p0, %p3281_p13 }
 0x106   : > { %3289 = shalt.err (!%p3286_p2)
}
 0x107   : > { %s3290_s19 = scalar_lea.vmem %s734_s26, 16  ;;  %s3297_s24 = scalar_lea.vmem %s734_s26, 32 }
 0x108   : > { %p3291_p5 = scmp.ne.s32.totalorder %s734_s26, %s3290_s19  ;;  %p3298_p4 = scmp.lt.s32.totalorder %s734_s26, %s734_s26 }
 0x109   : > { %p3299_p10 = scmp.lt.s32.totalorder %s3297_s24, %s3290_s19 }
 0x10a   : > { %p3293_p7 = pnand %p3291_p5, %p3622_p8 }
 0x10b   : > { %p3300_p11 = por %p3299_p10, %p3298_p4 }
 0x10c   : > { %p3294_p9 = pneg %p3293_p7 }
 0x10e   : > { %p3301_p12 = pnand %p3300_p11, %p3294_p9 }
 0x110   : > { %3304 = shalt.err (!%p3301_p12)
}
 0x111   : > { %2956 = dma.hbm_to_vmem [thread:$0]  (!%p3606_p6), %s4207_s16, 16, %s734_s26, [#allocation19]  }
 0x112   : > { %s2602_s30 = sadd.s32 4294967294, %s3421_s2   ;;  %s3823_s25 = sadd.s32 1, %s3421_s2  }
 0x113   : > { %s81_s8 = sadd.s32 1, %s3417_s6  ;;  %s78_s18 = ssub.s32 %s3421_s2, %s3823_s25 }
 0x114   : > { %p88_p8 = scmp.ne.s32.totalorder %s3417_s6, %s3413_s28  ;;  %p79_p1 = scmp.eq.s32.totalorder %s78_s18, 0 }
 0x115   : > { %p89_p3 = scmp.eq.s32.totalorder %s3421_s2, 0  ;;  %p94_p13 = scmp.ne.s32.totalorder %s3413_s28, %s3409_s27 }
 0x116   : > { %p585_p0 = scmp.eq.s32.totalorder %s3590_s0, 1  ;;  %p4269_p5 = scmp.eq.s32.totalorder %s3590_s0, 0 }
 0x117   : > { %s3835_s11 = scalar_select %p79_p1, %s3417_s6, %s81_s8  }
 0x118   : > { %p90_p2 = por %p89_p3, %p88_p8  ;;  %p3839_p7 = por %p4269_p5, %p94_p13 }
 0x119   : > { %p3843_p6 = por %p585_p0, %p88_p8  ;;  %p591_p9 = scmp.eq.s32.totalorder %s2602_s30, 1 }
 0x11a   : > { %p2974_p4 = scmp.lt.s32.totalorder %s3421_s2, 2  ;;  %s769_s20 = sand.u32 1, %s3417_s6  }
 0x11b   : > { %s4271_s26 = scalar_select %p3843_p6, 1, 0 }
 0x11c   : > { %p3849_p10 = por %p591_p9, %p94_p13  ;;  %s2614_s29 = sshll.u32 %s3421_s2, 4 }
 0x11d   : > { %s4273_s21 = sld [smem:[#allocation29_spill]]  ;;  %s772_s24 = scalar_lea.vmem [#allocation3], %s769_s20 }
 0x11e   : > { %s4272_s22 = scalar_select %p3849_p10, 1, 0 }
 0x11f   : > { %s779_s23 = sshll.u32 %s772_s24, 4  ;;  %p3861_p11 = pnand %p2974_p4, %p90_p2  ;;  %s3859_s23 = int_to_ptr.vmem [resolvable:$true] %s779_s23 }
 0x120   : > { %s770_s30 = scalar_lea.sflag [#allocation4], %s769_s20 }
 0x121   : > { %p3307_p8 = pneg %p3861_p11 }
 0x123   : > { %s3857_s19 = scalar_lea.hbm %s4273_s21, %s2614_s29  ;;  %s3310_s15 = scalar_lea.hbm %s4273_s21, 32 }
 0x124   : > { %s3305_s8 = scalar_lea.hbm %s3857_s19, 16  ;;  %p3311_p13 = scmp.lt.u32.totalorder %s3857_s19, %s4273_s21 }
 0x125   : > { %p3306_p12 = scmp.ne.s32.totalorder %s3857_s19, %s3305_s8  ;;  %p3312_p0 = scmp.lt.u32.totalorder %s3310_s15, %s3305_s8 }
 0x126   : > { %p3314_p5 = scmp.lt.u32.totalorder %s3305_s8, %s3857_s19 }
 0x127   : > { %p3308_p1 = pnand %p3307_p8, %p3306_p12  ;;  %p3313_p2 = por %p3312_p0, %p3311_p13 }
 0x129   : > { %p3309_p3 = pneg %p3308_p1  ;;  %p3315_p9 = por %p3314_p5, %p3313_p2 }
 0x12b   : > { %p3316_p4 = pnand %p3315_p9, %p3309_p3 }
 0x12d   : > { %3319 = shalt.err (!%p3316_p4)
}
 0x12e   : > { %s3320_s20 = scalar_lea.vmem %s3859_s23, 16  ;;  %s3434_s18 = smov [#allocation3]  }
 0x12f   : > { %p3321_p12 = scmp.ne.s32.totalorder %s3859_s23, %s3320_s20  ;;  %s3325_s29 = sshll.u32 %s3434_s18, 4  ;;  %s3326_s29 = int_to_ptr.vmem [resolvable:$false] %s3325_s29 }
 0x130   : > { %s3327_s4 = scalar_lea.vmem %s3326_s29, 32  ;;  %p3328_p6 = scmp.lt.s32.totalorder %s3859_s23, %s3326_s29 }
 0x131   : > { %p3323_p1 = pnand %p3321_p12, %p3307_p8  ;;  %p3329_p13 = scmp.lt.s32.totalorder %s3327_s4, %s3320_s20 }
 0x133   : > { %p3324_p10 = pneg %p3323_p1  ;;  %p3330_p0 = por %p3329_p13, %p3328_p6 }
 0x135   : > { %p3331_p2 = pnand %p3330_p0, %p3324_p10 }
 0x137   : > { %3334 = shalt.err (!%p3331_p2)
}
 0x138   : > { %2960 = dma.hbm_to_vmem [thread:$0]  (!%p3861_p11), %s3857_s19, 16, %s3859_s23, %s770_s30  }
 0x139   : > { %p4275_p3 = scmp.ne.s32.totalorder %s4259_s7, 0 }
 0x13a   : > { %s3893_s8 = sand.u32 (!%p4275_p3), 1, %s3413_s28  }
 0x13b   : > { %788 = sbr.rel (%p4275_p3) target bundleno = 5221 (0x1465), region = 112  ;;  %s791_s15 = scalar_lea.sflag (!%p4275_p3), [#allocation4], %s3893_s8 }
 0x13c   : > { %s793_s24 = scalar_lea.vmem (!%p4275_p3), [#allocation3], %s3893_s8 }
 0x142   : > { %3380 = dma.done.wait (%p3839_p7), %s791_s15, 16  }
 0x143   : > { %3382 = vsyncadd (%p3839_p7), %s791_s15, 4294967280  ;;  %p4276_p6 = scmp.eq.s32.totalorder %s3590_s0, 0 }
 0x145   : > { %3384 = dma.done.wait (%p4276_p6), [#allocation7], 64   ;;  %p4277_p10 = pmov %p4276_p6 }
 0x146   : > { %p4278_p11 = pmov %p4276_p6 }
 0x147   : > { %3386 = vsyncadd (%p4277_p10), [#allocation7], 4294967232 }
 0x148   : > { %3388 = dma.done.wait (%p4278_p11), [#allocation10], 64   ;;  %p4279_p8 = pmov %p4276_p6 }
 0x149   : > { %p4280_p5 = pmov %p4276_p6 }
 0x14a   : > { %3390 = vsyncadd (%p4279_p8), [#allocation10], 4294967232 }
 0x14b   : > { %3392 = dma.done.wait (%p4280_p5), [#allocation13], 64   ;;  %p4281_p9 = pmov %p4280_p5 }
 0x14c   : > { %p4282_p7 = pmov %p4280_p5 }
 0x14d   : > { %3394 = vsyncadd (%p4281_p9), [#allocation13], 4294967232 }
 0x14e   : > { %3396 = dma.done.wait (%p4282_p7), [#allocation16], 64   ;;  %p4283_p4 = pmov %p4280_p5 }
 0x150   : > { %3398 = vsyncadd (%p4283_p4), [#allocation16], 4294967232  ;;  %p4284_p12 = pmov %p4283_p4 }
 0x151   : > { %p4285_p1 = pmov %p4283_p4 }
 0x152   : > { %3400 = dma.done.wait (%p4284_p12), [#allocation19], 16  }
 0x153   : > { %3402 = vsyncadd (%p4285_p1), [#allocation19], 4294967280  ;;  %p900_p13 = scmp.lt.s32.totalorder %s3590_s0, 1  ;;  %s4286_s1 = sld [smem:[#allocation28_spill]]  ;;  %vm912_vm0 = vcmask 130048   ;;  %v3435_v10 = vmov 0.0|0.0  }
 0x154   : > { %s4287_s29 = sld [smem:[#allocation30_spill]]  ;;  %2844 = vmatprep.subr.bf16.mxu0 %v3435_v10  ;;  %vm3436_vm1 = vmmov 0   ;;  %v3437_v12 = vmov 0.0   ;;  %v2627_v17 = vld [vmem:[#allocation9] ss:$0 sm:$0xff]  ;;  %s4235_s19 = smov 96  }
 0x155   : > { %s3923_s7 = scalar_select %p900_p13, %s3590_s0, 1  ;;  %2732 = vmatprep.mubr.msk.f32.mxu0 %vm3436_vm1, %v3437_v12  ;;  %2735 = vmatprep.subr.mxu1 %v3437_v12  ;;  %v2628_v19 = vld [vmem:[#allocation11] ss:$0 sm:$0xff]  ;;  %v2629_v22 = vld [vmem:[#allocation6] ss:$0 sm:$0xff]  ;;  %vm1106_vm2 = vcmask 64512  }
 0x156   : > { %2737 = vmatprep.mubr.msk.f32.mxu1 %vm3436_vm1, %v3437_v12  ;;  %s3439_s23 = smov 112   ;;  %v3963_v28 = vld [vmem:[%s793_s24] ss:$0 sm:$0xff]  ;;  %v2636_v47 = vld [vmem:[#allocation8] ss:$0 sm:$0xff]  ;;  %s4289_s10 = sld [smem:[#allocation38_spill]] }
 0x157   : > { %s4234_s17 = sshll.u32 %s3923_s7, 3  ;;  %v2637_v0 = vld [vmem:[#allocation12] ss:$0 sm:$0xff]  ;;  %vm1402_vm3 = vcmask 261120   ;;  %s4290_s4 = smov 96   ;;  %vm2241_vm4 = vcmask 7168  }
 0x158   : > { %s4292_s3 = sld [smem:[#allocation40_spill]]  ;;  %s4295_s18 = sld [smem:[#allocation41_spill]]  ;;  %vm2395_vm5 = vcmask 24576  }
 0x159   : > { %s903_s30 = scalar_lea.vmem %s4286_s1, %s4234_s17  ;;  %s4291_s17 = sld [smem:[#allocation42_spill]] }
 0x15a   : > { %v3931_v1 = vld [vmem:[%s903_s30] sm:$0xff]  ;;  %v942_v9 = vld [vmem:[%s4287_s29 + $0x8] sm:$0xff]  ;;  %s4288_s30 = sld [smem:[#allocation32_spill]]  ;;  %s4294_s1 = sld [smem:[#allocation43_spill]] }
 0x15b   : > { %v913_v2 = vsel %vm912_vm0, %v3931_v1, 0.0  ;;  %v941_v8 = vld [vmem:[%s4287_s29] sm:$0xff]  ;;  %s4297_s24 = sld [smem:[#allocation46_spill]]  ;;  %s4298_s5 = sld [smem:[#allocation45_spill]] }
 0x15c   : > { %914 = vadd.xlane.f32.xlu0 %v913_v2  ;;  %v2845_v11 = vpack.c.bf16 %v942_v9, %v941_v8  ;;  %v1307_v57 = vld [vmem:[%s4289_s10] sm:$0xff]  ;;  %v1308_v58 = vld [vmem:[%s4289_s10 + $0x8] sm:$0xff]  ;;  %v1401_v9 = vld [vmem:[%s4203_s12 + $0x18] sm:$0xff]  ;;  %s899_s9 = scalar_lea.vmem [#allocation20], %s3893_s8  ;;  %p4300_p2 = scmp.ne.s32.totalorder %s4271_s26, 0 }
 0x15d   : > { %v2851_v59 = vpack.c.bf16 %v1308_v58, %v1307_v57  ;;  %v2638_v2 = vld [vmem:[#allocation14] ss:$0 sm:$0xff] }
 0x15e   : > { %2846 = vmatpush3.bf16.msra.mxu0 %v2845_v11 }
 0x15f   : > { %2740 = vmatprep.subr.mxu0 %v3437_v12 }
 0x160   : > { %v1194_v38 = vld [vmem:[%s4288_s30] sm:$0xff]  ;;  %v1195_v39 = vld [vmem:[%s4288_s30 + $0x8] sm:$0xff] }
 0x161   : > { %v2848_v40 = vpack.c.bf16 %v1195_v39, %v1194_v38  ;;  %v2645_v38 = vld [vmem:[%s4287_s29 + $0x10] sm:$0xff]  ;;  %v2646_v39 = vld [vmem:[%s4287_s29 + $0x18] sm:$0xff] }
 0x1e9   : > { %v915_v3 = vpop.xlane.xlu0 %914 }
 0x1ea   : > { %v917_v4 = vmul.f32 0.0625, %v915_v3 }
 0x1ec   : > { %v918_v5 = vsub.f32 %v3931_v1, %v917_v4 }
 0x1ee   : > { %v919_v6 = vmul.f32 %v918_v5, %v918_v5 }
 0x1f0   : > { %v920_v7 = vsel %vm912_vm0, %v919_v6, 0.0  ;;  %v1399_v6 = vld [vmem:[%s4203_s12 + $0x8] sm:$0xff] }
 0x1f1   : > { %921 = vadd.xlane.f32.xlu0 %v920_v7  ;;  %v1400_v7 = vld [vmem:[%s4203_s12 + $0x10] sm:$0xff] }
 0x1f2   : > { %v2857_v11 = vpack.c.bf16 %v1401_v9, %v1400_v7  ;;  %v2655_v9 = vld [vmem:[#allocation8 + $0x1] ss:$0 sm:$0xff] }
 0x27e   : > { %v922_v13 = vpop.xlane.xlu0 %921 }
 0x27f   : > { %v923_v14 = vmul.f32 0.0625, %v922_v13  ;;  %v2639_v13 = vld [vmem:[#allocation15] ss:$0 sm:$0xff] }
 0x281   : > { %v924_v15 = vadd.f32 1e-05, %v923_v14 }
 0x283   : > { %3033 = vrsqrt.f32 %v924_v15 }
 0x28d   : > { %v3034_v16 = vpop.eup %3033 }
 0x28e   : > { %v926_v18 = vmul.f32 %v3034_v16, %v918_v5  ;;  %v1398_v5 = vld [vmem:[%s4203_s12] sm:$0xff] }
 0x28f   : > { %v2854_v8 = vpack.c.bf16 %v1399_v6, %v1398_v5 }
 0x290   : > { %v933_v20 = vmul.f32 %v2627_v17, %v926_v18 }
 0x292   : > { %v940_v21 = vadd.f32 %v2628_v19, %v933_v20 }
 0x294   : > { %2733 = vmatmul.mubr.msk.f32.vlgmr.msra.gmra.mrb[0].mxu0 %vm912_vm0, %v940_v21 }
 0x295   : > { %2742 = vmatprep.mubr.msk.f32.mxu0 %vm3436_vm1, %v3437_v12 }
 0x367   : > { %v1019_v23 = vpop.f32.mrb[0].mxu0 }
 0x368   : > { %v1020_v24 = vadd.f32 %v2629_v22, %v1019_v23  ;;  %v2734_v25 = vpop.f32.mrb[1].mxu0 }
 0x36a   : > { %1113 = vrot.lane.b32.xlu0 %v1020_v24, %s4235_s19  ;;  %1030 = vrot.lane.b32.xlu1 %v1020_v24, %s3439_s23  ;;  %s4293_s19 = sld [smem:[#allocation44_spill]] }
 0x3dc   : > { %v1114_v26 = vpop.permute.xlu0 %1113  ;;  %v1031_v27 = vpop.permute.xlu1 %1030 }
 0x3dd   : > { %2736 = vmatpush3.xpose.msk.msra.mxu1 %vm912_vm0, %v1031_v27  ;;  %2741 = vmatpush3.msra.mxu0 %v1114_v26  ;;  %v2642_v27 = vld [vmem:[#allocation17] ss:$0 sm:$0xff] }
 0x3de   : > { %2847 = vmatprep.subr.bf16.mxu1 %v3435_v10  ;;  %2850 = vmatprep.subr.bf16.mxu0 %v3435_v10 }
 0x3e0   : > { %2738 = vmatmul.mubr.msk.f32.vlgmr.msra.gmra.mrb[0].mxu1 %vm912_vm0, %v1020_v24 }
 0x3e1   : > { %2749 = vmatprep.mubr.msk.f32.mxu1 %vm3436_vm1, %v3437_v12  ;;  %2849 = vmatpush3.bf16.msra.mxu1 %v2848_v40  ;;  %v2860_v40 = vpack.c.bf16 %v2646_v39, %v2645_v38  ;;  %v2665_v38 = vld [vmem:[%s4203_s12 + $0x38] sm:$0xff] }
 0x3e2   : > { %2853 = vmatprep.subr.bf16.mxu1 %v3435_v10 }
 0x4b3   : > { %v1102_v29 = vpop.f32.mrb[0].mxu1 }
 0x4b4   : > { %v1103_v30 = vadd.f32 %v3963_v28, %v1102_v29  ;;  %v2739_v31 = vpop.f32.mrb[1].mxu1 }
 0x4b6   : > { %v1107_v32 = vsel %vm1106_vm2, %v1103_v30, -inf }
 0x4b7   : > { %1108 = vmax.xlane.f32.xlu1 %v1107_v32 }
 0x544   : > { %v1109_v33 = vpop.xlane.xlu1 %1108 }
 0x545   : > { %v1110_v34 = vsub.f32 %v1103_v30, %v1109_v33 }
 0x547   : > { %v1111_v35 = vmul.f32 1.442695, %v1110_v34 }
 0x549   : > { %3035 = vpow2.f32 %v1111_v35 }
 0x553   : > { %v3036_v36 = vpop.eup %3035 }
 0x554   : > { %2743 = vmatmul.mubr.msk.f32.vlgmr.msra.gmra.mrb[2].mxu0 %vm1106_vm2, %v3036_v36  ;;  %v1189_v37 = vsel %vm1106_vm2, %v3036_v36, 0.0 }
 0x555   : > { %1190 = vadd.xlane.f32.xlu0 %v1189_v37  ;;  %2756 = vmatprep.mubr.msk.f32.mxu0 %vm3436_vm1, %v3437_v12 }
 0x556   : > { %2852 = vmatpush3.bf16.msra.mxu0 %v2851_v59 }
 0x557   : > { %2859 = vmatprep.subr.bf16.mxu0 %v3435_v10 }
 0x5e2   : > { %v1191_v41 = vpop.xlane.xlu0 %1190 }
 0x5e3   : > { %3037 = vrcp.f32 %v1191_v41 }
 0x5ed   : > { %v3038_v42 = vpop.eup %3037 }
 0x627   : > { %v1185_v43 = vpop.f32.mrb[2].mxu0 }
 0x628   : > { %v1193_v44 = vmul.f32 %v3038_v42, %v1185_v43  ;;  %v2744_v45 = vpop.f32.mrb[3].mxu0 }
 0x629   : > { %v2643_v45 = vld [vmem:[#allocation9 + $0x1] ss:$0 sm:$0xff] }
 0x62a   : > { %2750 = vmatmul.mubr.msk.f32.vlgmr.msra.gmra.mrb[2].mxu1 %vm912_vm0, %v1193_v44 }
 0x62b   : > { %2767 = vmatprep.mubr.msk.f32.mxu1 %vm3436_vm1, %v3437_v12  ;;  %2855 = vmatpush3.bf16.msra.mxu1 %v2854_v8 }
 0x62c   : > { %2856 = vmatprep.subr.bf16.mxu1 %v3435_v10 }
 0x62f   : > { %2858 = vmatpush3.bf16.msra.mxu1 %v2857_v11 }
 0x630   : > { %2782 = vmatprep.subr.mxu1 %v3437_v12 }
 0x6fd   : > { %v1265_v46 = vpop.f32.mrb[2].mxu1 }
 0x6fe   : > { %v1269_v48 = vadd.f32 %v1265_v46, %v3931_v1  ;;  %v2751_v49 = vpop.f32.mrb[3].mxu1 }
 0x700   : > { %v1277_v50 = vadd.f32 %v2636_v47, %v1269_v48  ;;  %v2644_v47 = vld [vmem:[#allocation11 + $0x1] ss:$0 sm:$0xff] }
 0x702   : > { %v1280_v51 = vsel %vm912_vm0, %v1277_v50, 0.0 }
 0x703   : > { %1281 = vadd.xlane.f32.xlu1 %v1280_v51 }
 0x790   : > { %v1282_v52 = vpop.xlane.xlu1 %1281 }
 0x791   : > { %v1283_v53 = vmul.f32 0.0625, %v1282_v52 }
 0x793   : > { %v1284_v54 = vsub.f32 %v1277_v50, %v1283_v53 }
 0x795   : > { %v1285_v55 = vmul.f32 %v1284_v54, %v1284_v54 }
 0x797   : > { %v1286_v56 = vsel %vm912_vm0, %v1285_v55, 0.0 }
 0x798   : > { %1287 = vadd.xlane.f32.xlu1 %v1286_v56 }
 0x825   : > { %v1288_v60 = vpop.xlane.xlu1 %1287 }
 0x826   : > { %v1289_v61 = vmul.f32 0.0625, %v1288_v60 }
 0x828   : > { %v1290_v62 = vadd.f32 1e-05, %v1289_v61 }
 0x82a   : > { %3039 = vrsqrt.f32 %v1290_v62 }
 0x834   : > { %v3040_v63 = vpop.eup %3039 }
 0x835   : > { %v1292_v1 = vmul.f32 %v3040_v63, %v1284_v54 }
 0x837   : > { %v1299_v3 = vmul.f32 %v2637_v0, %v1292_v1  ;;  %v2653_v1 = vld [vmem:[%s4288_s30 + $0x18] sm:$0xff] }
 0x839   : > { %v1306_v4 = vadd.f32 %v2638_v2, %v1299_v3 }
 0x83b   : > { %2757 = vmatmul.mubr.msk.f32.vlgmr.msra.gmra.mrb[4].mxu0 %vm912_vm0, %v1306_v4 }
 0x83c   : > { %2774 = vmatprep.mubr.msk.f32.mxu0 %vm3436_vm1, %v3437_v12  ;;  %2861 = vmatpush3.bf16.msra.mxu0 %v2860_v40  ;;  %v2660_v40 = vld [vmem:[#allocation15 + $0x1] ss:$0 sm:$0xff] }
 0x83d   : > { %2777 = vmatprep.subr.mxu0 %v3437_v12 }
 0x90e   : > { %v1385_v14 = vpop.f32.mrb[4].mxu0 }
 0x90f   : > { %v1386_v15 = vadd.f32 %v2639_v13, %v1385_v14  ;;  %v2758_v16 = vpop.f32.mrb[5].mxu0 }
 0x911   : > { %v1390_v17 = vmul.f32 0.044715, %v1386_v15  ;;  %v1389_v23 = vmul.f32 0.5, %v1386_v15 }
 0x913   : > { %v1391_v18 = vmul.f32 %v1390_v17, %v1386_v15 }
 0x915   : > { %v1392_v19 = vmul.f32 %v1391_v18, %v1386_v15 }
 0x917   : > { %v1393_v20 = vadd.f32 %v1392_v19, %v1386_v15 }
 0x919   : > { %v1394_v21 = vmul.f32 0.7978846, %v1393_v20 }
 0x91b   : > { %3041 = vtanh.f32 %v1394_v21  ;;  %v2658_v21 = vld [vmem:[%s4289_s10 + $0x10] sm:$0xff] }
 0x925   : > { %v3042_v22 = vpop.eup %3041 }
 0x926   : > { %v1396_v24 = vadd.f32 1.0, %v3042_v22  ;;  %v2659_v22 = vld [vmem:[%s4289_s10 + $0x18] sm:$0xff]  ;;  %s2417_s10 = sshll.u32 %s899_s9, 4  ;;  %s4149_s10 = int_to_ptr.vmem [resolvable:$true] %s2417_s10 }
 0x928   : > { %v1397_v25 = vmul.f32 %v1396_v24, %v1389_v23  ;;  %v2866_v23 = vpack.c.bf16 %v2659_v22, %v2658_v21 }
 0x92a   : > { %2768 = vmatmul.mubr.msk.f32.vlgmr.msra.gmra.mrb[4].mxu1 %vm1402_vm3, %v1397_v25 }
 0x92b   : > { %2784 = vmatprep.mubr.msk.f32.mxu1 %vm3436_vm1, %v3437_v12 }
 0x9fd   : > { %v1472_v26 = vpop.f32.mrb[4].mxu1 }
 0x9fe   : > { %v1476_v29 = vadd.f32 %v1472_v26, %v1277_v50  ;;  %v2769_v30 = vpop.f32.mrb[5].mxu1  ;;  %v2647_v50 = vld [vmem:[#allocation6 + $0x1] ss:$0 sm:$0xff] }
 0xa00   : > { %v4011_v31 = vadd.f32 %v2642_v27, %v1476_v29  ;;  %v2656_v29 = vld [vmem:[#allocation12 + $0x1] ss:$0 sm:$0xff] }
 0xa02   : > { %v1489_v32 = vsel %vm912_vm0, %v4011_v31, 0.0 }
 0xa03   : > { %1490 = vadd.xlane.f32.xlu1 %v1489_v32 }
 0xa90   : > { %v1491_v33 = vpop.xlane.xlu1 %1490 }
 0xa91   : > { %v1492_v34 = vmul.f32 0.0625, %v1491_v33 }
 0xa93   : > { %v1493_v35 = vsub.f32 %v4011_v31, %v1492_v34  ;;  %v2662_v34 = vld [vmem:[%s4203_s12 + $0x20] sm:$0xff] }
 0xa95   : > { %v1494_v36 = vmul.f32 %v1493_v35, %v1493_v35 }
 0xa97   : > { %v1495_v37 = vsel %vm912_vm0, %v1494_v36, 0.0  ;;  %v2664_v36 = vld [vmem:[%s4203_s12 + $0x30] sm:$0xff] }
 0xa98   : > { %1496 = vadd.xlane.f32.xlu1 %v1495_v37  ;;  %v2872_v39 = vpack.c.bf16 %v2665_v38, %v2664_v36 }
 0xb25   : > { %v1497_v41 = vpop.xlane.xlu1 %1496 }
 0xb26   : > { %v1498_v42 = vmul.f32 0.0625, %v1497_v41 }
 0xb28   : > { %v1499_v43 = vadd.f32 1e-05, %v1498_v42 }
 0xb2a   : > { %3043 = vrsqrt.f32 %v1499_v43 }
 0xb34   : > { %v3044_v44 = vpop.eup %3043 }
 0xb35   : > { %v1501_v46 = vmul.f32 %v3044_v44, %v1493_v35  ;;  %v2663_v35 = vld [vmem:[%s4203_s12 + $0x28] sm:$0xff] }
 0xb36   : > { %v2869_v37 = vpack.c.bf16 %v2663_v35, %v2662_v34 }
 0xb37   : > { %v1508_v48 = vmul.f32 %v2643_v45, %v1501_v46 }
 0xb39   : > { %v1515_v49 = vadd.f32 %v2644_v47, %v1508_v48 }
 0xb3b   : > { %2775 = vmatmul.mubr.msk.f32.vlgmr.msra.gmra.mrb[6].mxu0 %vm912_vm0, %v1515_v49 }
 0xb3c   : > { %2779 = vmatprep.mubr.msk.f32.mxu0 %vm3436_vm1, %v3437_v12 }
 0xc0e   : > { %v1596_v51 = vpop.f32.mrb[6].mxu0 }
 0xc0f   : > { %v1597_v52 = vadd.f32 %v2647_v50, %v1596_v51  ;;  %v2776_v53 = vpop.f32.mrb[7].mxu0 }
 0xc10   : > { %v2062_v53 = vld [vmem:[%s4205_s14] sm:$0xff] }
 0xc11   : > { %1601 = vrot.lane.b32.xlu1 %v1597_v52, %s3439_s23 }
 0xc83   : > { %v1602_v54 = vpop.permute.xlu1 %1601 }
 0xc84   : > { %2778 = vmatpush3.xpose.msk.msra.mxu0 %vm912_vm0, %v1602_v54  ;;  %v2063_v54 = vld [vmem:[%s4205_s14 + $0x8] sm:$0xff] }
 0xc85   : > { %2862 = vmatprep.subr.bf16.mxu0 %v3435_v10 }
 0xc87   : > { %2780 = vmatmul.mubr.msk.f32.vlgmr.msra.gmra.mrb[8].mxu0 %vm912_vm0, %v1597_v52 }
 0xc88   : > { %2791 = vmatprep.mubr.msk.f32.mxu0 %vm3436_vm1, %v3437_v12 }
 0xd5a   : > { %v1673_v55 = vpop.f32.mrb[8].mxu0 }
 0xd5b   : > { %v1674_v56 = vadd.f32 %v3963_v28, %v1673_v55  ;;  %v2781_v57 = vpop.f32.mrb[9].mxu0  ;;  %v2652_v28 = vld [vmem:[%s4288_s30 + $0x10] sm:$0xff]  ;;  %v2243_v55 = vld [vmem:[%s4291_s17] sm:$0xff] }
 0xd5c   : > { %v2863_v2 = vpack.c.bf16 %v2653_v1, %v2652_v28  ;;  %v2244_v57 = vld [vmem:[%s4291_s17 + $0x8] sm:$0xff] }
 0xd5d   : > { %v1677_v58 = vsel %vm1106_vm2, %v1674_v56, -inf }
 0xd5e   : > { %1678 = vmax.xlane.f32.xlu0 %v1677_v58  ;;  %2864 = vmatpush3.bf16.msra.mxu0 %v2863_v2  ;;  %v2881_v58 = vpack.c.bf16 %v2244_v57, %v2243_v55  ;;  %v2317_v2 = vld [vmem:[%s4293_s19] sm:$0xff] }
 0xd5f   : > { %2868 = vmatprep.subr.bf16.mxu0 %v3435_v10 }
 0xd74   : > { %1683 = vrot.lane.b32.xlu0 %v1597_v52, %s4290_s4  ;;  %s4296_s4 = sshll.u32 %s3923_s7, 3 }
 0xdeb   : > { %v1679_v59 = vpop.xlane.xlu0 %1678 }
 0xdec   : > { %v1680_v60 = vsub.f32 %v1674_v56, %v1679_v59  ;;  %v2875_v56 = vpack.c.bf16 %v2063_v54, %v2062_v53  ;;  %v2144_v59 = vld [vmem:[%s4292_s3] sm:$0xff] }
 0xdee   : > { %v1681_v61 = vmul.f32 1.442695, %v1680_v60  ;;  %v2145_v60 = vld [vmem:[%s4292_s3 + $0x8] sm:$0xff]  ;;  %s2402_s3 = scalar_lea.sflag [#allocation5], %s3893_s8 }
 0xdef   : > { %v1684_v62 = vpop.permute.xlu0 %1683  ;;  %v2878_v28 = vpack.c.bf16 %v2145_v60, %v2144_v59 }
 0xdf0   : > { %3045 = vpow2.f32 %v1681_v61  ;;  %2783 = vmatpush3.msra.mxu1 %v1684_v62  ;;  %v2667_v62 = vld [vmem:[#allocation17 + $0x1] ss:$0 sm:$0xff] }
 0xdf1   : > { %2865 = vmatprep.subr.bf16.mxu1 %v3435_v10 }
 0xdfa   : > { %v3046_v63 = vpop.eup %3045 }
 0xdfb   : > { %2785 = vmatmul.mubr.msk.f32.vlgmr.msra.gmra.mrb[6].mxu1 %vm1106_vm2, %v3046_v63  ;;  %v1759_v0 = vsel %vm1106_vm2, %v3046_v63, 0.0 }
 0xdfc   : > { %1760 = vadd.xlane.f32.xlu1 %v1759_v0  ;;  %2798 = vmatprep.mubr.msk.f32.mxu1 %vm3436_vm1, %v3437_v12 }
 0xdfd   : > { %2867 = vmatpush3.bf16.msra.mxu1 %v2866_v23 }
 0xdfe   : > { %2874 = vmatprep.subr.bf16.mxu1 %v3435_v10 }
 0xe89   : > { %v1761_v3 = vpop.xlane.xlu1 %1760 }
 0xe8a   : > { %3047 = vrcp.f32 %v1761_v3  ;;  %v2318_v3 = vld [vmem:[%s4293_s19 + $0x8] sm:$0xff] }
 0xe94   : > { %v3048_v4 = vpop.eup %3047 }
 0xece   : > { %v1755_v5 = vpop.f32.mrb[6].mxu1 }
 0xecf   : > { %v1763_v6 = vmul.f32 %v3048_v4, %v1755_v5  ;;  %v2786_v7 = vpop.f32.mrb[7].mxu1  ;;  %v2884_v4 = vpack.c.bf16 %v2318_v3, %v2317_v2  ;;  %v2319_v5 = vld [vmem:[%s4293_s19 + $0x10] sm:$0xff] }
 0xed1   : > { %2792 = vmatmul.mubr.msk.f32.vlgmr.msra.gmra.mrb[10].mxu0 %vm912_vm0, %v1763_v6  ;;  %v2320_v6 = vld [vmem:[%s4293_s19 + $0x18] sm:$0xff] }
 0xed2   : > { %2809 = vmatprep.mubr.msk.f32.mxu0 %vm3436_vm1, %v3437_v12  ;;  %2870 = vmatpush3.bf16.msra.mxu0 %v2869_v37  ;;  %v2887_v7 = vpack.c.bf16 %v2320_v6, %v2319_v5 }
 0xed3   : > { %2871 = vmatprep.subr.bf16.mxu0 %v3435_v10 }
 0xed6   : > { %2873 = vmatpush3.bf16.msra.mxu0 %v2872_v39 }
 0xed7   : > { %2880 = vmatprep.subr.bf16.mxu0 %v3435_v10 }
 0xfa4   : > { %v1836_v8 = vpop.f32.mrb[10].mxu0 }
 0xfa5   : > { %v1840_v11 = vadd.f32 %v1836_v8, %v4011_v31  ;;  %v2793_v13 = vpop.f32.mrb[11].mxu0  ;;  %v2657_v31 = vld [vmem:[#allocation14 + $0x1] ss:$0 sm:$0xff]  ;;  %v2216_v8 = vlaneseq }
 0xfa7   : > { %v4052_v14 = vadd.f32 %v2655_v9, %v1840_v11  ;;  %v2217_v9 = vshrl.u32 %v2216_v8, 7  ;;  %v2245_v11 = vld [vmem:[%s4294_s1] sm:$0x1]  ;;  %s907_s1 = scalar_lea.vmem %s4297_s24, %s4296_s4  ;;  %s4299_s4 = sld [smem:[#allocation47_spill]] }
 0xfa8   : > { %s3335_s24 = scalar_lea.vmem %s4149_s10, 16 }
 0xfa9   : > { %v1854_v15 = vsel %vm912_vm0, %v4052_v14, 0.0  ;;  %p3336_p0 = scmp.ne.s32.totalorder %s4149_s10, %s3335_s24 }
 0xfaa   : > { %1855 = vadd.xlane.f32.xlu0 %v1854_v15 }
 0xfab   : > { %p3337_p3 = pnand %p3336_p0, %p4300_p2 }
 0xfad   : > { %p3338_p6 = pneg %p3337_p3 }
0x1037   : > { %v1856_v16 = vpop.xlane.xlu0 %1855 }
0x1038   : > { %v1857_v17 = vmul.f32 0.0625, %v1856_v16  ;;  %v2218_v16 = vsub.s32 0, %v2217_v9 }
0x103a   : > { %v1858_v18 = vsub.f32 %v4052_v14, %v1857_v17  ;;  %v2668_v17 = vld [vmem:[#allocation18] ss:$0 sm:$0xff] }
0x103c   : > { %v1859_v19 = vmul.f32 %v1858_v18, %v1858_v18 }
0x103e   : > { %v1860_v20 = vsel %vm912_vm0, %v1859_v19, 0.0 }
0x103f   : > { %1861 = vadd.xlane.f32.xlu1 %v1860_v20 }
0x10cc   : > { %v1862_v24 = vpop.xlane.xlu1 %1861 }
0x10cd   : > { %v1863_v25 = vmul.f32 0.0625, %v1862_v24  ;;  %v2671_v24 = vld [vmem:[%s4295_s18] ss:$0 sm:$0xff]  ;;  %s2675_s18 = sshll.u32 %s3590_s0, 4  ;;  %s3440_s0 = smov [#allocation20]  }
0x10ce   : > { %s4147_s15 = scalar_lea.hbm %s4299_s4, %s2675_s18 }
0x10cf   : > { %v1864_v26 = vadd.f32 1e-05, %v1863_v25 }
0x10d1   : > { %3049 = vrsqrt.f32 %v1864_v26 }
0x10db   : > { %v3050_v27 = vpop.eup %3049 }
0x10dc   : > { %v1866_v30 = vmul.f32 %v3050_v27, %v1858_v18 }
0x10de   : > { %v1873_v32 = vmul.f32 %v2656_v29, %v1866_v30  ;;  %v2672_v29 = vld [vmem:[#allocation2] ss:$0 sm:$0xff] }
0x10e0   : > { %v1880_v33 = vadd.f32 %v2657_v31, %v1873_v32  ;;  %v2321_v32 = vld [vmem:[%s4298_s5] sm:$0x1] }
0x10e2   : > { %2799 = vmatmul.mubr.msk.f32.vlgmr.msra.gmra.mrb[8].mxu1 %vm912_vm0, %v1880_v33 }
0x10e3   : > { %2816 = vmatprep.mubr.msk.f32.mxu1 %vm3436_vm1, %v3437_v12  ;;  %2876 = vmatpush3.bf16.msra.mxu1 %v2875_v56 }
0x10e4   : > { %2877 = vmatprep.subr.bf16.mxu1 %v3435_v10 }
0x11b5   : > { %v1961_v41 = vpop.f32.mrb[8].mxu1 }
0x11b6   : > { %v1962_v42 = vadd.f32 %v2660_v40, %v1961_v41  ;;  %v2800_v43 = vpop.f32.mrb[9].mxu1 }
0x11b8   : > { %v1966_v44 = vmul.f32 0.044715, %v1962_v42  ;;  %v1965_v50 = vmul.f32 0.5, %v1962_v42 }
0x11ba   : > { %v1967_v45 = vmul.f32 %v1966_v44, %v1962_v42 }
0x11bc   : > { %v1968_v46 = vmul.f32 %v1967_v45, %v1962_v42 }
0x11be   : > { %v1969_v47 = vadd.f32 %v1968_v46, %v1962_v42 }
0x11c0   : > { %v1970_v48 = vmul.f32 0.7978846, %v1969_v47 }
0x11c2   : > { %3051 = vtanh.f32 %v1970_v48 }
0x11cc   : > { %v3052_v49 = vpop.eup %3051 }
0x11cd   : > { %v1972_v51 = vadd.f32 1.0, %v3052_v49 }
0x11cf   : > { %v1973_v52 = vmul.f32 %v1972_v51, %v1965_v50 }
0x11d1   : > { %2810 = vmatmul.mubr.msk.f32.vlgmr.msra.gmra.mrb[12].mxu0 %vm1402_vm3, %v1973_v52 }
0x11d2   : > { %2830 = vmatprep.mubr.msk.f32.mxu0 %vm3436_vm1, %v3437_v12  ;;  %2882 = vmatpush3.bf16.msra.mxu0 %v2881_v58 }
0x12a4   : > { %v2048_v61 = vpop.f32.mrb[12].mxu0 }
0x12a5   : > { %v2052_v63 = vadd.f32 %v2048_v61, %v4052_v14  ;;  %v2811_v0 = vpop.f32.mrb[13].mxu0 }
0x12a7   : > { %v2061_v1 = vadd.f32 %v2667_v62, %v2052_v63 }
0x12a9   : > { %2817 = vmatmul.mubr.msk.f32.vlgmr.msra.gmra.mrb[10].mxu1 %vm912_vm0, %v2061_v1  ;;  %2831 = vmatmul.mubr.msk.f32.vlgmr.msra.gmra.mrb[14].mxu0 %vm912_vm0, %v2061_v1 }
0x12aa   : > { %2879 = vmatpush3.bf16.msra.mxu1 %v2878_v28  ;;  %2823 = vmatprep.mubr.msk.f32.mxu1 %vm3436_vm1, %v3437_v12 }
0x12ab   : > { %2883 = vmatprep.subr.bf16.mxu1 %v3435_v10 }
0x12ad   : > { %2824 = vmatmul.mubr.msk.f32.vlgmr.msra.gmra.mrb[12].mxu1 %vm912_vm0, %v2061_v1 }
0x12ae   : > { %2885 = vmatpush3.bf16.msra.mxu1 %v2884_v4  ;;  %2841 = vmatprep.mubr.msk.f32.mxu1 %vm3436_vm1, %v3437_v12 }
0x12af   : > { %2886 = vmatprep.subr.bf16.mxu1 %v3435_v10 }
0x12b2   : > { %2888 = vmatpush3.bf16.msra.mxu1 %v2887_v7 }
0x137c   : > { %v2140_v13 = vpop.f32.mrb[10].mxu1  ;;  %v2312_v12 = vpop.f32.mrb[14].mxu0 }
0x137d   : > { %v2313_v14 = vadd.f32 %v2312_v12, %v2245_v11  ;;  %v2818_v10 = vpop.f32.mrb[11].mxu1  ;;  %v2832_v15 = vpop.f32.mrb[15].mxu0  ;;  %v2141_v20 = vadd.f32 %v2668_v17, %v2140_v13 }
0x137f   : > { %v2316_v18 = vmax.f32 %v2313_v14, 0.0 }
0x1380   : > { %v2212_v19 = vpop.f32.mrb[12].mxu1 }
0x1381   : > { %v2219_v21 = vrot.slane %v2212_v19, %v2218_v16  ;;  %v2825_v22 = vpop.f32.mrb[13].mxu1  ;;  %2842 = vmatmul.mubr.msk.f32.vlgmr.msra.gmra.mrb[14].mxu1 %vm1402_vm3, %v2316_v18 }
0x1383   : > { %v2220_v23 = vadd.f32 %v2219_v21, %v2141_v20 }
0x1385   : > { %v2221_v25 = vmax.f32 %v2220_v23, 0.0 }
0x1387   : > { %v2229_v26 = vmul.f32 %v2671_v24, %v2221_v25 }
0x1389   : > { %v2230_v27 = vsel %vm1402_vm3, %v2229_v26, 0.0 }
0x138a   : > { %2231 = vadd.xlane.f32.xlu1 %v2230_v27 }
0x1417   : > { %v2232_v30 = vpop.xlane.xlu1 %2231 }
0x1418   : > { %v2240_v31 = vadd.f32 %v2672_v29, %v2232_v30 }
0x141a   : > { %2242 = vst.msk [vmem:[%s907_s1] sm:$0xff] %vm2241_vm4, %v2240_v31  ;;  %s3339_s1 = sshll.u32 %s3440_s0, 4  ;;  %s3340_s1 = int_to_ptr.vmem [resolvable:$false] %s3339_s1 }
0x141b   : > { %s3341_s20 = scalar_lea.vmem %s3340_s1, 32  ;;  %p3342_p10 = scmp.lt.s32.totalorder %s4149_s10, %s3340_s1 }
0x141c   : > { %p3343_p11 = scmp.lt.s32.totalorder %s3341_s20, %s3335_s24 }
0x141e   : > { %p3344_p8 = por %p3343_p11, %p3342_p10 }
0x1420   : > { %p3345_p5 = pnand %p3344_p8, %p3338_p6 }
0x1454   : > { %v2391_v33 = vpop.f32.mrb[14].mxu1 }
0x1455   : > { %v2392_v34 = vadd.f32 %v2391_v33, %v2321_v32  ;;  %v2843_v35 = vpop.f32.mrb[15].mxu1 }
0x1457   : > { %2396 = vst.msk [vmem:[%s899_s9] sm:$0x1] %vm2395_vm5, %v2392_v34 }
0x1458   : > { %3348 = shalt.err (!%p3345_p5)
}
0x1459   : > { %s3349_s9 = scalar_lea.hbm %s4147_s15, 16  ;;  %s3353_s18 = scalar_lea.hbm %s4299_s4, 32 }
0x145a   : > { %p3350_p9 = scmp.ne.s32.totalorder %s4147_s15, %s3349_s9  ;;  %p3354_p12 = scmp.lt.u32.totalorder %s4147_s15, %s4299_s4 }
0x145b   : > { %p3355_p1 = scmp.lt.u32.totalorder %s3353_s18, %s3349_s9  ;;  %p3357_p0 = scmp.lt.u32.totalorder %s3349_s9, %s4147_s15 }
0x145c   : > { %p3351_p7 = pnand %p3350_p9, %p4300_p2 }
0x145d   : > { %p3356_p13 = por %p3355_p1, %p3354_p12 }
0x145e   : > { %p3352_p4 = pneg %p3351_p7 }
0x145f   : > { %p3358_p3 = por %p3357_p0, %p3356_p13 }
0x1461   : > { %p3359_p6 = pnand %p3358_p3, %p3352_p4 }
0x1463   : > { %3362 = shalt.err (!%p3359_p6)
}
0x1464   : > { %2927 = dma.vmem_to_hbm [thread:$0]  (%p4300_p2), %s4149_s10, 16, %s4147_s15, %s2402_s3  }
0x1465 PF: > { %s2436_s24 = sand.u32 1, %s3409_s27   ;;  %p4301_p10 = scmp.ne.s32.totalorder %s4272_s22, 0 }
0x1466   : > { %p4302_p11 = scmp.ge.s32.totalorder %s3421_s2, 2  ;;  %s2437_s0 = scalar_lea.sflag [#allocation5], %s2436_s24 }
0x1468   : > { %p2962_p8 = pnand %p4302_p11, %p4301_p10 }
0x146a   : > { %3404 = dma.done.wait (!%p2962_p8), %s2437_s0, 16  }
0x146b   : > { %3406 = vsyncadd (!%p2962_p8), %s2437_s0, 4294967280  ;;  %p45_p5 = scmp.ge.s32.totalorder %s3823_s25, 4   ;;  %s4303_s27 = smov %s3413_s28 }
0x146c   : > { %s4304_s28 = smov %s3417_s6  ;;  %s4305_s6 = smov %s3835_s11 }
0x146d   : > { %s4306_s2 = smov %s3823_s25  ;;  %47 = sbr.rel (!%p45_p5) target bundleno = 31 (0x1f), region = 220 }
0x1474   :  { %2441 = vsyncpa [#allocation4], 1 }
0x1475   :  { %2443 = vsyncpa [#allocation4 + $0x1], 1 }
0x1476   :  { %2444 = vsyncpa [#allocation7], 1 }
0x1477   :  { %2445 = vsyncpa [#allocation10], 1 }
0x1478   :  { %2446 = vsyncpa [#allocation13], 1 }
0x1479   :  { %2447 = vsyncpa [#allocation16], 1 }
0x147a   :  { %2448 = vsyncpa [#allocation19], 1 }
0x147b   :  { %2449 = vsyncpa [#allocation5], 1 }
0x147c   :  { %2451 = vsyncpa [#allocation5 + $0x1], 1 }

</bundles_post_ra>
